<compile_context>
chip_gen: v6e
topology: v6e:2x2x1
jax: 0.10.0
libtpu: 0.0.40
codegen_flags: <defaults>
</compile_context>

<pallas_src>
from functools import partial

import jax
import jax.numpy as jnp
from jax.experimental import pallas as pl
from jax.experimental.pallas import tpu as pltpu  # noqa: F401  (single fused VMEM-resident kernel needs no manual DMA)


# ----------------------------------------------------------------------------
# Fused Pallas kernel: the whole LeNet5 forward pass.
# ----------------------------------------------------------------------------
def _lenet5_kernel(x_ref, w1_ref, b1_ref, t1e_ref, t1o_ref,
                   w2_ref, b2_ref, t2e_ref, t2o_ref,
                   fc1w_ref, fc1b_ref, fc2w_ref, fc2b_ref,
                   fc3w_ref, fc3b_ref, o_ref, *, batch, bp):
    f32 = jnp.float32
    bf16 = jnp.bfloat16
    B = batch
    R1 = B * 28 - 4              # conv1 output rows in the stride-28 layout
    R2 = B * 12 - 4              # conv2 output rows in the stride-12 layout

    # ---- conv1 (1->6, k=5) + bias + ReLU.  y1: (R1, 256), col = parity*128 +
    # co*12 + jj with ow = 2*jj + parity, so pool1's width half is an aligned
    # half-slice max.  Rows crossing an image boundary are garbage but finite
    # and never selected downstream.
    y1 = jnp.zeros((R1, 256), f32)
    for dy in range(5):
        y1 = y1 + jnp.dot(x_ref[dy:dy + R1, :].astype(bf16), w1_ref[dy],
                          preferred_element_type=f32)
    y1 = jnp.maximum(y1 + b1_ref[...], 0.0)

    # ---- pool1 (2x2): width = 128-aligned slice max; height = 0/1 selector dots.
    yw = jnp.maximum(y1[:, :128], y1[:, 128:]).astype(bf16)          # (R1, 128)
    p1 = jnp.maximum(
        jnp.dot(t1e_ref[...], yw, preferred_element_type=f32),
        jnp.dot(t1o_ref[...], yw, preferred_element_type=f32))       # (B*12, 128)

    # ---- conv2 (6->16, k=5) + bias + ReLU.  y2: (R2, 256), col = parity*128 +
    # co*4 + jj (ow = 2*jj + parity); contraction rows are p1's ci*12+u columns
    # (padding columns carry zero weights and zero activations).
    y2 = jnp.zeros((R2, 256), f32)
    for dy in range(5):
        y2 = y2 + jnp.dot(p1[dy:dy + R2, :].astype(bf16), w2_ref[dy],
                          preferred_element_type=f32)
    y2 = jnp.maximum(y2 + b2_ref[...], 0.0)

    # ---- pool2 (2x2): same structure; p2 rows come out as h*bp + b so the fc1
    # slices below are 8-row aligned.
    yw2 = jnp.maximum(y2[:, :128], y2[:, 128:]).astype(bf16)         # (R2, 128)
    p2 = jnp.maximum(
        jnp.dot(t2e_ref[...], yw2, preferred_element_type=f32),
        jnp.dot(t2o_ref[...], yw2, preferred_element_type=f32))      # (4*bp, 128)
    p2 = p2.astype(bf16)

    # ---- fc1: torch (c, h, w) flatten folded into per-h weight blocks; four
    # aligned 8-row slices, no gather matmul, no in-kernel reshape.
    acc = jnp.zeros((bp, 120), f32)
    for h in range(4):
        acc = acc + jnp.dot(p2[h * bp:(h + 1) * bp, :], fc1w_ref[h],
                            preferred_element_type=f32)
    h1 = jnp.maximum(acc + fc1b_ref[...], 0.0).astype(bf16)          # (bp, 120)

    # ---- fc2 / fc3
    h2 = jnp.maximum(jnp.dot(h1, fc2w_ref[...], preferred_element_type=f32)
                     + fc2b_ref[...], 0.0).astype(bf16)              # (bp, 84)
    out = jnp.dot(h2, fc3w_ref[...], preferred_element_type=f32) + fc3b_ref[...]
    o_ref[...] = out[:B, :].astype(o_ref.dtype)                      # (B, 10)


# ----------------------------------------------------------------------------
# Deterministic synthetic parameters with the torch module's shapes.
# ----------------------------------------------------------------------------
def init_params(key):
    ks = jax.random.split(key, 10)

    def u(k, shape, fan_in):
        bound = 1.0 / jnp.sqrt(fan_in)
        return jax.random.uniform(k, shape, jnp.float32, -bound, bound)

    return {
        "conv1_w": u(ks[0], (6, 1, 5, 5), 25),
        "conv1_b": u(ks[1], (6,), 25),
        "conv2_w": u(ks[2], (16, 6, 5, 5), 150),
        "conv2_b": u(ks[3], (16,), 150),
        "fc1_w": u(ks[4], (120, 256), 256),   # torch Linear: (out, in)
        "fc1_b": u(ks[5], (120,), 256),
        "fc2_w": u(ks[6], (84, 120), 120),
        "fc2_b": u(ks[7], (84,), 120),
        "fc3_w": u(ks[8], (10, 84), 84),
        "fc3_b": u(ks[9], (10,), 84),
    }


# ----------------------------------------------------------------------------
# One-time (outside jit) repack of torch-layout weights into kernel layouts.
# ----------------------------------------------------------------------------
def prepare_params(params, batch):
    f32 = jnp.float32
    bf16 = jnp.bfloat16
    B = batch
    bp = ((B + 7) // 8) * 8
    R1 = B * 28 - 4
    R2 = B * 12 - 4

    # conv1 banded weights, even/odd output-column split:
    #   W1[dy, u, parity*128 + co*12 + jj] = conv1_w[co, 0, dy, u - (2*jj+parity)]
    band1 = ((jnp.arange(28)[:, None] - jnp.arange(24)[None, :])[None]
             == jnp.arange(5)[:, None, None]).astype(f32)            # (5,28,24)
    w1k = params["conv1_w"].reshape(6, 5, 5).astype(f32)             # [co,dy,dx]
    w1c = jnp.einsum("cyx,xuo->yuco", w1k, band1)                    # (5,28,6,24)
    w1c = w1c.reshape(5, 28, 6, 12, 2)                               # ow = 2*jj+par
    w1c = jnp.transpose(w1c, (0, 1, 4, 2, 3)).reshape(5, 28, 2, 72)
    w1c = jnp.pad(w1c, ((0, 0), (0, 0), (0, 0), (0, 56))).reshape(5, 28, 256)

    b1 = jnp.broadcast_to(params["conv1_b"].astype(f32)[None, :, None],
                          (2, 6, 12)).reshape(2, 72)
    b1 = jnp.pad(b1, ((0, 0), (0, 56))).reshape(1, 256)

    # conv2 banded weights:
    #   W2[dy, ci*12+u, parity*128 + co*4 + jj] = conv2_w[co, ci, dy, u - (2*jj+parity)]
    band2 = ((jnp.arange(12)[:, None] - jnp.arange(8)[None, :])[None]
             == jnp.arange(5)[:, None, None]).astype(f32)            # (5,12,8)
    w2k = params["conv2_w"].astype(f32)                              # [co,ci,dy,dx]
    w2c = jnp.einsum("kcyx,xuo->ycuko", w2k, band2)                  # (5,6,12,16,8)
    w2c = w2c.reshape(5, 72, 16, 4, 2)
    w2c = jnp.transpose(w2c, (0, 1, 4, 2, 3)).reshape(5, 72, 2, 64)
    w2c = jnp.pad(w2c, ((0, 0), (0, 56), (0, 0), (0, 64))).reshape(5, 128, 256)

    b2 = jnp.broadcast_to(params["conv2_b"].astype(f32)[None, :, None],
                          (2, 16, 4)).reshape(2, 64)
    b2 = jnp.pad(b2, ((0, 0), (0, 64))).reshape(1, 256)

    # pool1 row selectors: p1[b*12+j] = max(yw[b*28+2j], yw[b*28+2j+1])
    r = jnp.arange(B * 12)
    src1 = (r // 12) * 28 + (r % 12) * 2
    cols1 = jnp.arange(R1)[None, :]
    t1e = (src1[:, None] == cols1).astype(f32)
    t1o = ((src1 + 1)[:, None] == cols1).astype(f32)

    # pool2 row selectors: p2[h*bp+b] = max(yw2[b*12+2h], yw2[b*12+2h+1]);
    # rows with b >= B stay all-zero (padding that keeps fc1 slices 8-row aligned).
    rr = jnp.arange(4 * bp)
    h_idx, b_idx = rr // bp, rr % bp
    src2 = b_idx * 12 + 2 * h_idx
    valid = (b_idx < B)[:, None]
    cols2 = jnp.arange(R2)[None, :]
    t2e = ((src2[:, None] == cols2) & valid).astype(f32)
    t2o = (((src2 + 1)[:, None] == cols2) & valid).astype(f32)

    # fc1 weights: per-h blocks over columns co*4+w (padded to 128 lanes), so
    # h1[b] = sum_h p2[h*bp+b] @ fc1w[h] reproduces torch's (c,h,w) flatten.
    fc1_wt = params["fc1_w"].astype(f32).T.reshape(16, 4, 4, 120)    # [co,h,w,o]
    fc1_h = jnp.transpose(fc1_wt, (1, 0, 2, 3)).reshape(4, 64, 120)
    fc1_h = jnp.pad(fc1_h, ((0, 0), (0, 64), (0, 0)))                # (4,128,120)

    return {
        "w1": w1c.astype(bf16), "b1": b1,
        "t1e": t1e.astype(bf16), "t1o": t1o.astype(bf16),
        "w2": w2c.astype(bf16), "b2": b2,
        "t2e": t2e.astype(bf16), "t2o": t2o.astype(bf16),
        "fc1_w": fc1_h.astype(bf16),
        "fc1_b": params["fc1_b"].reshape(1, 120).astype(f32),
        "fc2_w": params["fc2_w"].T.astype(bf16),
        "fc2_b": params["fc2_b"].reshape(1, 84).astype(f32),
        "fc3_w": params["fc3_w"].T.astype(bf16),
        "fc3_b": params["fc3_b"].reshape(1, 10).astype(f32),
    }


# ----------------------------------------------------------------------------
# Forward: a single pallas_call; every operand is a full VMEM-resident block.
# ----------------------------------------------------------------------------
def _full_spec(shape):
    nd = len(shape)
    return pl.BlockSpec(shape, lambda i, _nd=nd: (0,) * _nd)


@jax.jit
def lenet5_forward(prep, x):
    """x: (B, 1, 28, 28) NCHW float32 -> (B, 10) logits."""
    B = x.shape[0]
    bp = ((B + 7) // 8) * 8
    R1, R2 = B * 28 - 4, B * 12 - 4
    x2 = x.reshape(B * 28, 28)       # metadata-only relabel; only glue op in the jit

    args = (x2, prep["w1"], prep["b1"], prep["t1e"], prep["t1o"],
            prep["w2"], prep["b2"], prep["t2e"], prep["t2o"],
            prep["fc1_w"], prep["fc1_b"], prep["fc2_w"], prep["fc2_b"],
            prep["fc3_w"], prep["fc3_b"])

    flops = 2 * (5 * R1 * 28 * 256 + 2 * (B * 12) * R1 * 128
                 + 5 * R2 * 128 * 256 + 2 * (4 * bp) * R2 * 128
                 + 4 * bp * 128 * 120 + bp * 120 * 84 + bp * 84 * 10)
    bytes_accessed = sum(int(a.size) * a.dtype.itemsize for a in args) + B * 10 * 4

    return pl.pallas_call(
        partial(_lenet5_kernel, batch=B, bp=bp),
        out_shape=jax.ShapeDtypeStruct((B, 10), jnp.float32),
        grid=(1,),
        in_specs=[_full_spec(a.shape) for a in args],
        out_specs=_full_spec((B, 10)),
        cost_estimate=pl.CostEstimate(flops=int(flops), transcendentals=0,
                                      bytes_accessed=int(bytes_accessed)),
    )(*args)


if __name__ == "__main__":
    key = jax.random.PRNGKey(0)
    k_x, k_p = jax.random.split(key)
    B = 2
    # LeNet5's fc1 (16*4*4) implies 28x28 inputs; keep batch small (latency path).
    x = jax.random.normal(k_x, (B, 1, 28, 28), jnp.float32)
    params = init_params(k_p)
    prep = prepare_params(params, batch=B)   # one-time repack, outside the jit

    out = lenet5_forward(prep, x)
    out = jax.block_until_ready(out)
    assert out.shape == (B, 10), out.shape
    print("KERNEL_OK")
</pallas_src>

<mosaic_0001>
module attributes {stable_mosaic.version = 11 : i64} {
  func.func @_lenet5_kernel(%arg0: i32, %arg1: memref<56x28xf32, #tpu.memory_space<vmem>>, %arg2: memref<5x28x256xbf16, #tpu.memory_space<vmem>>, %arg3: memref<1x256xf32, #tpu.memory_space<vmem>>, %arg4: memref<24x52xbf16, #tpu.memory_space<vmem>>, %arg5: memref<24x52xbf16, #tpu.memory_space<vmem>>, %arg6: memref<5x128x256xbf16, #tpu.memory_space<vmem>>, %arg7: memref<1x256xf32, #tpu.memory_space<vmem>>, %arg8: memref<32x20xbf16, #tpu.memory_space<vmem>>, %arg9: memref<32x20xbf16, #tpu.memory_space<vmem>>, %arg10: memref<4x128x120xbf16, #tpu.memory_space<vmem>>, %arg11: memref<1x120xf32, #tpu.memory_space<vmem>>, %arg12: memref<120x84xbf16, #tpu.memory_space<vmem>>, %arg13: memref<1x84xf32, #tpu.memory_space<vmem>>, %arg14: memref<84x10xbf16, #tpu.memory_space<vmem>>, %arg15: memref<1x10xf32, #tpu.memory_space<vmem>>, %arg16: memref<2x10xf32, #tpu.memory_space<vmem>>) attributes {dimension_semantics = [#tpu.dimension_semantics<arbitrary>], iteration_bounds = array<i64: 1>, scalar_prefetch = 0 : i64, scratch_operands = 0 : i64, tpu.core_type = #tpu.core_type<tc>, window_params = [{pipeline_mode = #tpu.pipeline_mode<synchronous>, transform_indices = @transform_0, window_bounds = array<i64: 56, 28>}, {pipeline_mode = #tpu.pipeline_mode<synchronous>, transform_indices = @transform_1, window_bounds = array<i64: 5, 28, 256>}, {pipeline_mode = #tpu.pipeline_mode<synchronous>, transform_indices = @transform_2, window_bounds = array<i64: 1, 256>}, {pipeline_mode = #tpu.pipeline_mode<synchronous>, transform_indices = @transform_3, window_bounds = array<i64: 24, 52>}, {pipeline_mode = #tpu.pipeline_mode<synchronous>, transform_indices = @transform_4, window_bounds = array<i64: 24, 52>}, {pipeline_mode = #tpu.pipeline_mode<synchronous>, transform_indices = @transform_5, window_bounds = array<i64: 5, 128, 256>}, {pipeline_mode = #tpu.pipeline_mode<synchronous>, transform_indices = @transform_6, window_bounds = array<i64: 1, 256>}, {pipeline_mode = #tpu.pipeline_mode<synchronous>, transform_indices = @transform_7, window_bounds = array<i64: 32, 20>}, {pipeline_mode = #tpu.pipeline_mode<synchronous>, transform_indices = @transform_8, window_bounds = array<i64: 32, 20>}, {pipeline_mode = #tpu.pipeline_mode<synchronous>, transform_indices = @transform_9, window_bounds = array<i64: 4, 128, 120>}, {pipeline_mode = #tpu.pipeline_mode<synchronous>, transform_indices = @transform_10, window_bounds = array<i64: 1, 120>}, {pipeline_mode = #tpu.pipeline_mode<synchronous>, transform_indices = @transform_11, window_bounds = array<i64: 120, 84>}, {pipeline_mode = #tpu.pipeline_mode<synchronous>, transform_indices = @transform_12, window_bounds = array<i64: 1, 84>}, {pipeline_mode = #tpu.pipeline_mode<synchronous>, transform_indices = @transform_13, window_bounds = array<i64: 84, 10>}, {pipeline_mode = #tpu.pipeline_mode<synchronous>, transform_indices = @transform_14, window_bounds = array<i64: 1, 10>}, {pipeline_mode = #tpu.pipeline_mode<synchronous>, transform_indices = @transform_15, window_bounds = array<i64: 2, 10>}]} {
    %cst = arith.constant 0.000000e+00 : f32
    %0 = vector.broadcast %cst : f32 to vector<52x256xf32>
    %c0 = arith.constant 0 : index
    %c0_0 = arith.constant 0 : index
    %1 = vector.load %arg1[%c0, %c0_0] : memref<56x28xf32, #tpu.memory_space<vmem>>, vector<52x28xf32>
    %2 = arith.truncf %1 : vector<52x28xf32> to vector<52x28xbf16>
    %c0_1 = arith.constant 0 : index
    %c0_2 = arith.constant 0 : index
    %c0_3 = arith.constant 0 : index
    %3 = vector.load %arg2[%c0_1, %c0_2, %c0_3] : memref<5x28x256xbf16, #tpu.memory_space<vmem>>, vector<1x28x256xbf16>
    %4 = vector.shape_cast %3 : vector<1x28x256xbf16> to vector<28x256xbf16>
    %cst_4 = arith.constant dense<0.000000e+00> : vector<52x256xf32>
    %5 = tpu.matmul %2, %4, %cst_4 {dimension_numbers = #tpu.dot_dimension_numbers<[1], [0], [0], [1], [0, 0, 1, 1], [], []>} : vector<52x28xbf16>, vector<28x256xbf16>, vector<52x256xf32> -> vector<52x256xf32>
    %6 = arith.addf %0, %5 : vector<52x256xf32>
    %c1 = arith.constant 1 : index
    %c0_5 = arith.constant 0 : index
    %7 = vector.load %arg1[%c1, %c0_5] : memref<56x28xf32, #tpu.memory_space<vmem>>, vector<52x28xf32>
    %8 = arith.truncf %7 : vector<52x28xf32> to vector<52x28xbf16>
    %c1_6 = arith.constant 1 : index
    %c0_7 = arith.constant 0 : index
    %c0_8 = arith.constant 0 : index
    %9 = vector.load %arg2[%c1_6, %c0_7, %c0_8] : memref<5x28x256xbf16, #tpu.memory_space<vmem>>, vector<1x28x256xbf16>
    %10 = vector.shape_cast %9 : vector<1x28x256xbf16> to vector<28x256xbf16>
    %cst_9 = arith.constant dense<0.000000e+00> : vector<52x256xf32>
    %11 = tpu.matmul %8, %10, %cst_9 {dimension_numbers = #tpu.dot_dimension_numbers<[1], [0], [0], [1], [0, 0, 1, 1], [], []>} : vector<52x28xbf16>, vector<28x256xbf16>, vector<52x256xf32> -> vector<52x256xf32>
    %12 = arith.addf %6, %11 : vector<52x256xf32>
    %c2 = arith.constant 2 : index
    %c0_10 = arith.constant 0 : index
    %13 = vector.load %arg1[%c2, %c0_10] : memref<56x28xf32, #tpu.memory_space<vmem>>, vector<52x28xf32>
    %14 = arith.truncf %13 : vector<52x28xf32> to vector<52x28xbf16>
    %c2_11 = arith.constant 2 : index
    %c0_12 = arith.constant 0 : index
    %c0_13 = arith.constant 0 : index
    %15 = vector.load %arg2[%c2_11, %c0_12, %c0_13] : memref<5x28x256xbf16, #tpu.memory_space<vmem>>, vector<1x28x256xbf16>
    %16 = vector.shape_cast %15 : vector<1x28x256xbf16> to vector<28x256xbf16>
    %cst_14 = arith.constant dense<0.000000e+00> : vector<52x256xf32>
    %17 = tpu.matmul %14, %16, %cst_14 {dimension_numbers = #tpu.dot_dimension_numbers<[1], [0], [0], [1], [0, 0, 1, 1], [], []>} : vector<52x28xbf16>, vector<28x256xbf16>, vector<52x256xf32> -> vector<52x256xf32>
    %18 = arith.addf %12, %17 : vector<52x256xf32>
    %c3 = arith.constant 3 : index
    %c0_15 = arith.constant 0 : index
    %19 = vector.load %arg1[%c3, %c0_15] : memref<56x28xf32, #tpu.memory_space<vmem>>, vector<52x28xf32>
    %20 = arith.truncf %19 : vector<52x28xf32> to vector<52x28xbf16>
    %c3_16 = arith.constant 3 : index
    %c0_17 = arith.constant 0 : index
    %c0_18 = arith.constant 0 : index
    %21 = vector.load %arg2[%c3_16, %c0_17, %c0_18] : memref<5x28x256xbf16, #tpu.memory_space<vmem>>, vector<1x28x256xbf16>
    %22 = vector.shape_cast %21 : vector<1x28x256xbf16> to vector<28x256xbf16>
    %cst_19 = arith.constant dense<0.000000e+00> : vector<52x256xf32>
    %23 = tpu.matmul %20, %22, %cst_19 {dimension_numbers = #tpu.dot_dimension_numbers<[1], [0], [0], [1], [0, 0, 1, 1], [], []>} : vector<52x28xbf16>, vector<28x256xbf16>, vector<52x256xf32> -> vector<52x256xf32>
    %24 = arith.addf %18, %23 : vector<52x256xf32>
    %c4 = arith.constant 4 : index
    %c0_20 = arith.constant 0 : index
    %25 = vector.load %arg1[%c4, %c0_20] : memref<56x28xf32, #tpu.memory_space<vmem>>, vector<52x28xf32>
    %26 = arith.truncf %25 : vector<52x28xf32> to vector<52x28xbf16>
    %c4_21 = arith.constant 4 : index
    %c0_22 = arith.constant 0 : index
    %c0_23 = arith.constant 0 : index
    %27 = vector.load %arg2[%c4_21, %c0_22, %c0_23] : memref<5x28x256xbf16, #tpu.memory_space<vmem>>, vector<1x28x256xbf16>
    %28 = vector.shape_cast %27 : vector<1x28x256xbf16> to vector<28x256xbf16>
    %cst_24 = arith.constant dense<0.000000e+00> : vector<52x256xf32>
    %29 = tpu.matmul %26, %28, %cst_24 {dimension_numbers = #tpu.dot_dimension_numbers<[1], [0], [0], [1], [0, 0, 1, 1], [], []>} : vector<52x28xbf16>, vector<28x256xbf16>, vector<52x256xf32> -> vector<52x256xf32>
    %30 = arith.addf %24, %29 : vector<52x256xf32>
    %c0_25 = arith.constant 0 : index
    %c0_26 = arith.constant 0 : index
    %31 = vector.load %arg3[%c0_25, %c0_26] : memref<1x256xf32, #tpu.memory_space<vmem>>, vector<1x256xf32>
    %32 = vector.broadcast %31 : vector<1x256xf32> to vector<52x256xf32>
    %33 = arith.addf %30, %32 : vector<52x256xf32>
    %cst_27 = arith.constant 0.000000e+00 : f32
    %34 = vector.broadcast %cst_27 : f32 to vector<52x256xf32>
    %35 = arith.maximumf %33, %34 : vector<52x256xf32>
    %36 = vector.extract_strided_slice %35 {offsets = [0, 0], sizes = [52, 128], strides = [1, 1]} : vector<52x256xf32> to vector<52x128xf32>
    %37 = vector.extract_strided_slice %35 {offsets = [0, 128], sizes = [52, 128], strides = [1, 1]} : vector<52x256xf32> to vector<52x128xf32>
    %38 = arith.maximumf %36, %37 : vector<52x128xf32>
    %39 = arith.truncf %38 : vector<52x128xf32> to vector<52x128xbf16>
    %c0_28 = arith.constant 0 : index
    %c0_29 = arith.constant 0 : index
    %40 = vector.load %arg4[%c0_28, %c0_29] : memref<24x52xbf16, #tpu.memory_space<vmem>>, vector<24x52xbf16>
    %cst_30 = arith.constant dense<0.000000e+00> : vector<24x128xf32>
    %41 = tpu.matmul %40, %39, %cst_30 {dimension_numbers = #tpu.dot_dimension_numbers<[1], [0], [0], [1], [0, 0, 1, 1], [], []>} : vector<24x52xbf16>, vector<52x128xbf16>, vector<24x128xf32> -> vector<24x128xf32>
    %c0_31 = arith.constant 0 : index
    %c0_32 = arith.constant 0 : index
    %42 = vector.load %arg5[%c0_31, %c0_32] : memref<24x52xbf16, #tpu.memory_space<vmem>>, vector<24x52xbf16>
    %cst_33 = arith.constant dense<0.000000e+00> : vector<24x128xf32>
    %43 = tpu.matmul %42, %39, %cst_33 {dimension_numbers = #tpu.dot_dimension_numbers<[1], [0], [0], [1], [0, 0, 1, 1], [], []>} : vector<24x52xbf16>, vector<52x128xbf16>, vector<24x128xf32> -> vector<24x128xf32>
    %44 = arith.maximumf %41, %43 : vector<24x128xf32>
    %cst_34 = arith.constant 0.000000e+00 : f32
    %45 = vector.broadcast %cst_34 : f32 to vector<20x256xf32>
    %46 = vector.extract_strided_slice %44 {offsets = [0, 0], sizes = [20, 128], strides = [1, 1]} : vector<24x128xf32> to vector<20x128xf32>
    %47 = arith.truncf %46 : vector<20x128xf32> to vector<20x128xbf16>
    %c0_35 = arith.constant 0 : index
    %c0_36 = arith.constant 0 : index
    %c0_37 = arith.constant 0 : index
    %48 = vector.load %arg6[%c0_35, %c0_36, %c0_37] : memref<5x128x256xbf16, #tpu.memory_space<vmem>>, vector<1x128x256xbf16>
    %49 = vector.shape_cast %48 : vector<1x128x256xbf16> to vector<128x256xbf16>
    %cst_38 = arith.constant dense<0.000000e+00> : vector<20x256xf32>
    %50 = tpu.matmul %47, %49, %cst_38 {dimension_numbers = #tpu.dot_dimension_numbers<[1], [0], [0], [1], [0, 0, 1, 1], [], []>} : vector<20x128xbf16>, vector<128x256xbf16>, vector<20x256xf32> -> vector<20x256xf32>
    %51 = arith.addf %45, %50 : vector<20x256xf32>
    %52 = vector.extract_strided_slice %44 {offsets = [1, 0], sizes = [20, 128], strides = [1, 1]} : vector<24x128xf32> to vector<20x128xf32>
    %53 = arith.truncf %52 : vector<20x128xf32> to vector<20x128xbf16>
    %c1_39 = arith.constant 1 : index
    %c0_40 = arith.constant 0 : index
    %c0_41 = arith.constant 0 : index
    %54 = vector.load %arg6[%c1_39, %c0_40, %c0_41] : memref<5x128x256xbf16, #tpu.memory_space<vmem>>, vector<1x128x256xbf16>
    %55 = vector.shape_cast %54 : vector<1x128x256xbf16> to vector<128x256xbf16>
    %cst_42 = arith.constant dense<0.000000e+00> : vector<20x256xf32>
    %56 = tpu.matmul %53, %55, %cst_42 {dimension_numbers = #tpu.dot_dimension_numbers<[1], [0], [0], [1], [0, 0, 1, 1], [], []>} : vector<20x128xbf16>, vector<128x256xbf16>, vector<20x256xf32> -> vector<20x256xf32>
    %57 = arith.addf %51, %56 : vector<20x256xf32>
    %58 = vector.extract_strided_slice %44 {offsets = [2, 0], sizes = [20, 128], strides = [1, 1]} : vector<24x128xf32> to vector<20x128xf32>
    %59 = arith.truncf %58 : vector<20x128xf32> to vector<20x128xbf16>
    %c2_43 = arith.constant 2 : index
    %c0_44 = arith.constant 0 : index
    %c0_45 = arith.constant 0 : index
    %60 = vector.load %arg6[%c2_43, %c0_44, %c0_45] : memref<5x128x256xbf16, #tpu.memory_space<vmem>>, vector<1x128x256xbf16>
    %61 = vector.shape_cast %60 : vector<1x128x256xbf16> to vector<128x256xbf16>
    %cst_46 = arith.constant dense<0.000000e+00> : vector<20x256xf32>
    %62 = tpu.matmul %59, %61, %cst_46 {dimension_numbers = #tpu.dot_dimension_numbers<[1], [0], [0], [1], [0, 0, 1, 1], [], []>} : vector<20x128xbf16>, vector<128x256xbf16>, vector<20x256xf32> -> vector<20x256xf32>
    %63 = arith.addf %57, %62 : vector<20x256xf32>
    %64 = vector.extract_strided_slice %44 {offsets = [3, 0], sizes = [20, 128], strides = [1, 1]} : vector<24x128xf32> to vector<20x128xf32>
    %65 = arith.truncf %64 : vector<20x128xf32> to vector<20x128xbf16>
    %c3_47 = arith.constant 3 : index
    %c0_48 = arith.constant 0 : index
    %c0_49 = arith.constant 0 : index
    %66 = vector.load %arg6[%c3_47, %c0_48, %c0_49] : memref<5x128x256xbf16, #tpu.memory_space<vmem>>, vector<1x128x256xbf16>
    %67 = vector.shape_cast %66 : vector<1x128x256xbf16> to vector<128x256xbf16>
    %cst_50 = arith.constant dense<0.000000e+00> : vector<20x256xf32>
    %68 = tpu.matmul %65, %67, %cst_50 {dimension_numbers = #tpu.dot_dimension_numbers<[1], [0], [0], [1], [0, 0, 1, 1], [], []>} : vector<20x128xbf16>, vector<128x256xbf16>, vector<20x256xf32> -> vector<20x256xf32>
    %69 = arith.addf %63, %68 : vector<20x256xf32>
    %70 = vector.extract_strided_slice %44 {offsets = [4, 0], sizes = [20, 128], strides = [1, 1]} : vector<24x128xf32> to vector<20x128xf32>
    %71 = arith.truncf %70 : vector<20x128xf32> to vector<20x128xbf16>
    %c4_51 = arith.constant 4 : index
    %c0_52 = arith.constant 0 : index
    %c0_53 = arith.constant 0 : index
    %72 = vector.load %arg6[%c4_51, %c0_52, %c0_53] : memref<5x128x256xbf16, #tpu.memory_space<vmem>>, vector<1x128x256xbf16>
    %73 = vector.shape_cast %72 : vector<1x128x256xbf16> to vector<128x256xbf16>
    %cst_54 = arith.constant dense<0.000000e+00> : vector<20x256xf32>
    %74 = tpu.matmul %71, %73, %cst_54 {dimension_numbers = #tpu.dot_dimension_numbers<[1], [0], [0], [1], [0, 0, 1, 1], [], []>} : vector<20x128xbf16>, vector<128x256xbf16>, vector<20x256xf32> -> vector<20x256xf32>
    %75 = arith.addf %69, %74 : vector<20x256xf32>
    %c0_55 = arith.constant 0 : index
    %c0_56 = arith.constant 0 : index
    %76 = vector.load %arg7[%c0_55, %c0_56] : memref<1x256xf32, #tpu.memory_space<vmem>>, vector<1x256xf32>
    %77 = vector.broadcast %76 : vector<1x256xf32> to vector<20x256xf32>
    %78 = arith.addf %75, %77 : vector<20x256xf32>
    %cst_57 = arith.constant 0.000000e+00 : f32
    %79 = vector.broadcast %cst_57 : f32 to vector<20x256xf32>
    %80 = arith.maximumf %78, %79 : vector<20x256xf32>
    %81 = vector.extract_strided_slice %80 {offsets = [0, 0], sizes = [20, 128], strides = [1, 1]} : vector<20x256xf32> to vector<20x128xf32>
    %82 = vector.extract_strided_slice %80 {offsets = [0, 128], sizes = [20, 128], strides = [1, 1]} : vector<20x256xf32> to vector<20x128xf32>
    %83 = arith.maximumf %81, %82 : vector<20x128xf32>
    %84 = arith.truncf %83 : vector<20x128xf32> to vector<20x128xbf16>
    %c0_58 = arith.constant 0 : index
    %c0_59 = arith.constant 0 : index
    %85 = vector.load %arg8[%c0_58, %c0_59] : memref<32x20xbf16, #tpu.memory_space<vmem>>, vector<32x20xbf16>
    %cst_60 = arith.constant dense<0.000000e+00> : vector<32x128xf32>
    %86 = tpu.matmul %85, %84, %cst_60 {dimension_numbers = #tpu.dot_dimension_numbers<[1], [0], [0], [1], [0, 0, 1, 1], [], []>} : vector<32x20xbf16>, vector<20x128xbf16>, vector<32x128xf32> -> vector<32x128xf32>
    %c0_61 = arith.constant 0 : index
    %c0_62 = arith.constant 0 : index
    %87 = vector.load %arg9[%c0_61, %c0_62] : memref<32x20xbf16, #tpu.memory_space<vmem>>, vector<32x20xbf16>
    %cst_63 = arith.constant dense<0.000000e+00> : vector<32x128xf32>
    %88 = tpu.matmul %87, %84, %cst_63 {dimension_numbers = #tpu.dot_dimension_numbers<[1], [0], [0], [1], [0, 0, 1, 1], [], []>} : vector<32x20xbf16>, vector<20x128xbf16>, vector<32x128xf32> -> vector<32x128xf32>
    %89 = arith.maximumf %86, %88 : vector<32x128xf32>
    %90 = arith.truncf %89 : vector<32x128xf32> to vector<32x128xbf16>
    %cst_64 = arith.constant 0.000000e+00 : f32
    %91 = vector.broadcast %cst_64 : f32 to vector<8x120xf32>
    %92 = vector.extract_strided_slice %90 {offsets = [0, 0], sizes = [8, 128], strides = [1, 1]} : vector<32x128xbf16> to vector<8x128xbf16>
    %c0_65 = arith.constant 0 : index
    %c0_66 = arith.constant 0 : index
    %c0_67 = arith.constant 0 : index
    %93 = vector.load %arg10[%c0_65, %c0_66, %c0_67] : memref<4x128x120xbf16, #tpu.memory_space<vmem>>, vector<1x128x120xbf16>
    %94 = vector.shape_cast %93 : vector<1x128x120xbf16> to vector<128x120xbf16>
    %cst_68 = arith.constant dense<0.000000e+00> : vector<8x120xf32>
    %95 = tpu.matmul %92, %94, %cst_68 {dimension_numbers = #tpu.dot_dimension_numbers<[1], [0], [0], [1], [0, 0, 1, 1], [], []>} : vector<8x128xbf16>, vector<128x120xbf16>, vector<8x120xf32> -> vector<8x120xf32>
    %96 = arith.addf %91, %95 : vector<8x120xf32>
    %97 = vector.extract_strided_slice %90 {offsets = [8, 0], sizes = [8, 128], strides = [1, 1]} : vector<32x128xbf16> to vector<8x128xbf16>
    %c1_69 = arith.constant 1 : index
    %c0_70 = arith.constant 0 : index
    %c0_71 = arith.constant 0 : index
    %98 = vector.load %arg10[%c1_69, %c0_70, %c0_71] : memref<4x128x120xbf16, #tpu.memory_space<vmem>>, vector<1x128x120xbf16>
    %99 = vector.shape_cast %98 : vector<1x128x120xbf16> to vector<128x120xbf16>
    %cst_72 = arith.constant dense<0.000000e+00> : vector<8x120xf32>
    %100 = tpu.matmul %97, %99, %cst_72 {dimension_numbers = #tpu.dot_dimension_numbers<[1], [0], [0], [1], [0, 0, 1, 1], [], []>} : vector<8x128xbf16>, vector<128x120xbf16>, vector<8x120xf32> -> vector<8x120xf32>
    %101 = arith.addf %96, %100 : vector<8x120xf32>
    %102 = vector.extract_strided_slice %90 {offsets = [16, 0], sizes = [8, 128], strides = [1, 1]} : vector<32x128xbf16> to vector<8x128xbf16>
    %c2_73 = arith.constant 2 : index
    %c0_74 = arith.constant 0 : index
    %c0_75 = arith.constant 0 : index
    %103 = vector.load %arg10[%c2_73, %c0_74, %c0_75] : memref<4x128x120xbf16, #tpu.memory_space<vmem>>, vector<1x128x120xbf16>
    %104 = vector.shape_cast %103 : vector<1x128x120xbf16> to vector<128x120xbf16>
    %cst_76 = arith.constant dense<0.000000e+00> : vector<8x120xf32>
    %105 = tpu.matmul %102, %104, %cst_76 {dimension_numbers = #tpu.dot_dimension_numbers<[1], [0], [0], [1], [0, 0, 1, 1], [], []>} : vector<8x128xbf16>, vector<128x120xbf16>, vector<8x120xf32> -> vector<8x120xf32>
    %106 = arith.addf %101, %105 : vector<8x120xf32>
    %107 = vector.extract_strided_slice %90 {offsets = [24, 0], sizes = [8, 128], strides = [1, 1]} : vector<32x128xbf16> to vector<8x128xbf16>
    %c3_77 = arith.constant 3 : index
    %c0_78 = arith.constant 0 : index
    %c0_79 = arith.constant 0 : index
    %108 = vector.load %arg10[%c3_77, %c0_78, %c0_79] : memref<4x128x120xbf16, #tpu.memory_space<vmem>>, vector<1x128x120xbf16>
    %109 = vector.shape_cast %108 : vector<1x128x120xbf16> to vector<128x120xbf16>
    %cst_80 = arith.constant dense<0.000000e+00> : vector<8x120xf32>
    %110 = tpu.matmul %107, %109, %cst_80 {dimension_numbers = #tpu.dot_dimension_numbers<[1], [0], [0], [1], [0, 0, 1, 1], [], []>} : vector<8x128xbf16>, vector<128x120xbf16>, vector<8x120xf32> -> vector<8x120xf32>
    %111 = arith.addf %106, %110 : vector<8x120xf32>
    %c0_81 = arith.constant 0 : index
    %c0_82 = arith.constant 0 : index
    %112 = vector.load %arg11[%c0_81, %c0_82] : memref<1x120xf32, #tpu.memory_space<vmem>>, vector<1x120xf32>
    %113 = vector.broadcast %112 : vector<1x120xf32> to vector<8x120xf32>
    %114 = arith.addf %111, %113 : vector<8x120xf32>
    %cst_83 = arith.constant 0.000000e+00 : f32
    %115 = vector.broadcast %cst_83 : f32 to vector<8x120xf32>
    %116 = arith.maximumf %114, %115 : vector<8x120xf32>
    %117 = arith.truncf %116 : vector<8x120xf32> to vector<8x120xbf16>
    %c0_84 = arith.constant 0 : index
    %c0_85 = arith.constant 0 : index
    %118 = vector.load %arg12[%c0_84, %c0_85] : memref<120x84xbf16, #tpu.memory_space<vmem>>, vector<120x84xbf16>
    %cst_86 = arith.constant dense<0.000000e+00> : vector<8x84xf32>
    %119 = tpu.matmul %117, %118, %cst_86 {dimension_numbers = #tpu.dot_dimension_numbers<[1], [0], [0], [1], [0, 0, 1, 1], [], []>} : vector<8x120xbf16>, vector<120x84xbf16>, vector<8x84xf32> -> vector<8x84xf32>
    %c0_87 = arith.constant 0 : index
    %c0_88 = arith.constant 0 : index
    %120 = vector.load %arg13[%c0_87, %c0_88] : memref<1x84xf32, #tpu.memory_space<vmem>>, vector<1x84xf32>
    %121 = vector.broadcast %120 : vector<1x84xf32> to vector<8x84xf32>
    %122 = arith.addf %119, %121 : vector<8x84xf32>
    %cst_89 = arith.constant 0.000000e+00 : f32
    %123 = vector.broadcast %cst_89 : f32 to vector<8x84xf32>
    %124 = arith.maximumf %122, %123 : vector<8x84xf32>
    %125 = arith.truncf %124 : vector<8x84xf32> to vector<8x84xbf16>
    %c0_90 = arith.constant 0 : index
    %c0_91 = arith.constant 0 : index
    %126 = vector.load %arg14[%c0_90, %c0_91] : memref<84x10xbf16, #tpu.memory_space<vmem>>, vector<84x10xbf16>
    %cst_92 = arith.constant dense<0.000000e+00> : vector<8x10xf32>
    %127 = tpu.matmul %125, %126, %cst_92 {dimension_numbers = #tpu.dot_dimension_numbers<[1], [0], [0], [1], [0, 0, 1, 1], [], []>} : vector<8x84xbf16>, vector<84x10xbf16>, vector<8x10xf32> -> vector<8x10xf32>
    %c0_93 = arith.constant 0 : index
    %c0_94 = arith.constant 0 : index
    %128 = vector.load %arg15[%c0_93, %c0_94] : memref<1x10xf32, #tpu.memory_space<vmem>>, vector<1x10xf32>
    %129 = vector.broadcast %128 : vector<1x10xf32> to vector<8x10xf32>
    %130 = arith.addf %127, %129 : vector<8x10xf32>
    %131 = vector.extract_strided_slice %130 {offsets = [0, 0], sizes = [2, 10], strides = [1, 1]} : vector<8x10xf32> to vector<2x10xf32>
    %c0_95 = arith.constant 0 : index
    %c0_96 = arith.constant 0 : index
    %132 = vector.load %arg16[%c0_95, %c0_96] : memref<2x10xf32, #tpu.memory_space<vmem>>, vector<2x10xf32>
    tpu.vector_store %arg16[%c0_95, %c0_96], %131 {strides = array<i32>} : memref<2x10xf32, #tpu.memory_space<vmem>>, vector<2x10xf32>,
    return
  }
  func.func @transform_0(%arg0: i32) -> (i32, i32) {
    %c0_i32 = arith.constant 0 : i32
    %c0_i32_0 = arith.constant 0 : i32
    %c0_i32_1 = arith.constant 0 : i32
    return %c0_i32, %c0_i32_0 : i32, i32
  }
  func.func @transform_1(%arg0: i32) -> (i32, i32, i32) {
    %c0_i32 = arith.constant 0 : i32
    %c0_i32_0 = arith.constant 0 : i32
    %c0_i32_1 = arith.constant 0 : i32
    %c0_i32_2 = arith.constant 0 : i32
    return %c0_i32, %c0_i32_0, %c0_i32_1 : i32, i32, i32
  }
  func.func @transform_2(%arg0: i32) -> (i32, i32) {
    %c0_i32 = arith.constant 0 : i32
    %c0_i32_0 = arith.constant 0 : i32
    %c0_i32_1 = arith.constant 0 : i32
    return %c0_i32, %c0_i32_0 : i32, i32
  }
  func.func @transform_3(%arg0: i32) -> (i32, i32) {
    %c0_i32 = arith.constant 0 : i32
    %c0_i32_0 = arith.constant 0 : i32
    %c0_i32_1 = arith.constant 0 : i32
    return %c0_i32, %c0_i32_0 : i32, i32
  }
  func.func @transform_4(%arg0: i32) -> (i32, i32) {
    %c0_i32 = arith.constant 0 : i32
    %c0_i32_0 = arith.constant 0 : i32
    %c0_i32_1 = arith.constant 0 : i32
    return %c0_i32, %c0_i32_0 : i32, i32
  }
  func.func @transform_5(%arg0: i32) -> (i32, i32, i32) {
    %c0_i32 = arith.constant 0 : i32
    %c0_i32_0 = arith.constant 0 : i32
    %c0_i32_1 = arith.constant 0 : i32
    %c0_i32_2 = arith.constant 0 : i32
    return %c0_i32, %c0_i32_0, %c0_i32_1 : i32, i32, i32
  }
  func.func @transform_6(%arg0: i32) -> (i32, i32) {
    %c0_i32 = arith.constant 0 : i32
    %c0_i32_0 = arith.constant 0 : i32
    %c0_i32_1 = arith.constant 0 : i32
    return %c0_i32, %c0_i32_0 : i32, i32
  }
  func.func @transform_7(%arg0: i32) -> (i32, i32) {
    %c0_i32 = arith.constant 0 : i32
    %c0_i32_0 = arith.constant 0 : i32
    %c0_i32_1 = arith.constant 0 : i32
    return %c0_i32, %c0_i32_0 : i32, i32
  }
  func.func @transform_8(%arg0: i32) -> (i32, i32) {
    %c0_i32 = arith.constant 0 : i32
    %c0_i32_0 = arith.constant 0 : i32
    %c0_i32_1 = arith.constant 0 : i32
    return %c0_i32, %c0_i32_0 : i32, i32
  }
  func.func @transform_9(%arg0: i32) -> (i32, i32, i32) {
    %c0_i32 = arith.constant 0 : i32
    %c0_i32_0 = arith.constant 0 : i32
    %c0_i32_1 = arith.constant 0 : i32
    %c0_i32_2 = arith.constant 0 : i32
    return %c0_i32, %c0_i32_0, %c0_i32_1 : i32, i32, i32
  }
  func.func @transform_10(%arg0: i32) -> (i32, i32) {
    %c0_i32 = arith.constant 0 : i32
    %c0_i32_0 = arith.constant 0 : i32
    %c0_i32_1 = arith.constant 0 : i32
    return %c0_i32, %c0_i32_0 : i32, i32
  }
  func.func @transform_11(%arg0: i32) -> (i32, i32) {
    %c0_i32 = arith.constant 0 : i32
    %c0_i32_0 = arith.constant 0 : i32
    %c0_i32_1 = arith.constant 0 : i32
    return %c0_i32, %c0_i32_0 : i32, i32
  }
  func.func @transform_12(%arg0: i32) -> (i32, i32) {
    %c0_i32 = arith.constant 0 : i32
    %c0_i32_0 = arith.constant 0 : i32
    %c0_i32_1 = arith.constant 0 : i32
    return %c0_i32, %c0_i32_0 : i32, i32
  }
  func.func @transform_13(%arg0: i32) -> (i32, i32) {
    %c0_i32 = arith.constant 0 : i32
    %c0_i32_0 = arith.constant 0 : i32
    %c0_i32_1 = arith.constant 0 : i32
    return %c0_i32, %c0_i32_0 : i32, i32
  }
  func.func @transform_14(%arg0: i32) -> (i32, i32) {
    %c0_i32 = arith.constant 0 : i32
    %c0_i32_0 = arith.constant 0 : i32
    %c0_i32_1 = arith.constant 0 : i32
    return %c0_i32, %c0_i32_0 : i32, i32
  }
  func.func @transform_15(%arg0: i32) -> (i32, i32) {
    %c0_i32 = arith.constant 0 : i32
    %c0_i32_0 = arith.constant 0 : i32
    %c0_i32_1 = arith.constant 0 : i32
    return %c0_i32, %c0_i32_0 : i32, i32
  }
}

</mosaic_0001>

<bundles_post_ra>
// kernel: lenet5_forward.1
= control target key start
LH: loop header
LB: loop body
LE: loop exit
PB: predicated region body
PF: predicated region fallthrough
CT: control target
= control target key end

     0   :  { %20 = vsyncpa [#allocation3], 0  ;;  %s4227_s0 = inlined_call_operand.vmem [shape: f32[56,28], index: 0, kind: input, shape index: {}]   ;;  %s4228_s1 = inlined_call_operand.hbm [shape: bf16[5,28,256], index: 1, kind: input, shape index: {}]   ;;  %s4229_s2 = inlined_call_operand.vmem [shape: f32[1,256], index: 2, kind: input, shape index: {}]   ;;  %s4230_s3 = inlined_call_operand.vmem [shape: bf16[24,52], index: 3, kind: input, shape index: {}]   ;;  %s4231_s4 = inlined_call_operand.vmem [shape: bf16[24,52], index: 4, kind: input, shape index: {}]   ;;  %s4232_s5 = inlined_call_operand.vmem [shape: bf16[5,128,256], index: 5, kind: input, shape index: {}]   ;;  %s4233_s6 = inlined_call_operand.vmem [shape: f32[1,256], index: 6, kind: input, shape index: {}]   ;;  %s4234_s7 = inlined_call_operand.vmem [shape: bf16[32,20], index: 7, kind: input, shape index: {}]   ;;  %s4235_s8 = inlined_call_operand.vmem [shape: bf16[32,20], index: 8, kind: input, shape index: {}]   ;;  %s4236_s9 = inlined_call_operand.vmem [shape: bf16[4,128,120], index: 9, kind: input, shape index: {}]   ;;  %s4237_s10 = inlined_call_operand.vmem [shape: f32[1,120], index: 10, kind: input, shape index: {}]   ;;  %s4238_s11 = inlined_call_operand.vmem [shape: bf16[120,84], index: 11, kind: input, shape index: {}]   ;;  %s4239_s12 = inlined_call_operand.vmem [shape: f32[1,84], index: 12, kind: input, shape index: {}]   ;;  %s4240_s13 = inlined_call_operand.vmem [shape: bf16[84,10], index: 13, kind: input, shape index: {}]   ;;  %s4241_s14 = inlined_call_operand.vmem [shape: f32[1,10], index: 14, kind: input, shape index: {}]   ;;  %s4242_s15 = inlined_call_operand.hbm [shape: f32[2,10], index: 15, kind: output, shape index: {}]  }
   0x1   :  { %21 = vsyncpa [#allocation4], 0  ;;  %s3351_s18 = smov [#allocation2]  }
   0x2   :  { %s29_s19 = sshll.u32 %s3351_s18, 4  ;;  %s30_s19 = int_to_ptr.vmem [resolvable:$true] %s29_s19 }
   0x3   :  { %s3315_s20 = scalar_lea.vmem %s30_s19, 2560  ;;  %p3320_p1 = scmp.lt.s32.totalorder %s30_s19, %s30_s19 }
   0x4   :  { %p3316_p0 = scmp.ne.s32.totalorder %s30_s19, %s3315_s20  ;;  %p3321_p2 = scmp.lt.s32.totalorder %s3315_s20, %s3315_s20 }
   0x6   :  { %p3322_p3 = por %p3321_p2, %p3320_p1 }
   0x8   :  { %p3323_p4 = pnand %p3322_p3, %p3316_p0 }
   0xa   :  { %3326 = shalt.err (!%p3323_p4)
}
   0xb   :  { %s3352_s21 = smov 128   ;;  %s3353_s22 = smov 8  }
   0xc   :  { %35 = dma.hbm_to_vmem [thread:$0]  %s4228_s1, 2560, %s30_s19, [#allocation3], %s3352_s21, %s3352_s21, %s3353_s22  }
   0xd   :  { %3347 = dma.done.wait [#allocation3], 2560  }
   0xe   :  { %3348 = vsyncadd [#allocation3], 4294964736  ;;  %v3354_v0 = vmov 0   ;;  %vm128_vm0 = vcmask 1045504   ;;  %v3109_v5 = vld [vmem:[#allocation2 + $0x24] ss:$8 sps:$4 sm:$0xff]  }
   0xf   :  { %167 = vmatprep.mubr.bf16.mxu0 %v3354_v0  ;;  %274 = vmatprep.mubr.bf16.mxu1 %v3354_v0  ;;  %v3103_v1 = vld [vmem:[#allocation2 + $0x34] ss:$8 sps:$4 sm:$0x3f]   ;;  %v3107_v3 = vld [vmem:[#allocation2 + $0x30] ss:$8 sps:$4 sm:$0x3f]  }
  0x10   :  { %v3105_v2 = vld [vmem:[#allocation2 + $0x14] ss:$8 sps:$4 sm:$0x3f]   ;;  %2564 = vmatprep.subr.msk.bf16.mxu0 %vm128_vm0, %v3103_v1  ;;  %v3108_v4 = vld [vmem:[#allocation2 + $0x10] ss:$8 sps:$4 sm:$0x3f]  }
  0x11   :  { %2573 = vmatprep.subr.msk.bf16.mxu1 %vm128_vm0, %v3105_v2  ;;  %v130_v6 = vsel %vm128_vm0, %v3107_v3, 0  ;;  %v237_v7 = vsel %vm128_vm0, %v3108_v4, 0  ;;  %v3111_v8 = vld [vmem:[#allocation2 + $0x4] ss:$8 sps:$4 sm:$0xff]   ;;  %v3113_v9 = vld [vmem:[#allocation2 + $0x20] ss:$8 sps:$4 sm:$0xff]  }
  0x12   :  { %148 = vmatpush1.bf16.msra.mxu0 %v130_v6  ;;  %255 = vmatpush1.bf16.msra.mxu1 %v237_v7  ;;  %v3114_v10 = vld [vmem:[#allocation2] ss:$8 sps:$4 sm:$0xff]   ;;  %vm115_vm1 = vcmask 228352   ;;  %v3115_v17 = vld [vmem:[#allocation2 + $0x54] ss:$8 sps:$4 sm:$0x3f]  }
  0x13   :  { %v81_v11 = vld [vmem:[%s4227_s0 + $0x1] sm:$0xff]  ;;  %149 = vmatprep.subr.bf16.mxu0 %v3109_v5  ;;  %256 = vmatprep.subr.bf16.mxu1 %v3111_v8  ;;  %v82_v12 = vld [vmem:[%s4227_s0 + $0x9] sm:$0xff]  ;;  %v83_v19 = vld [vmem:[%s4227_s0 + $0x11] sm:$0xff]  ;;  %vm786_vm2 = vcmask 424960   ;;  %vm793_vm3 = vcmask 1041408   ;;  %vm1247_vm6 = vcmask 1046528  }
  0x14   :  { %v66_v13 = vld [vmem:[%s4227_s0] sm:$0xff]  ;;  %v67_v14 = vld [vmem:[%s4227_s0 + $0x8] sm:$0xff]  ;;  %v88_v15 = vpack.c.bf16 %v82_v12, %v81_v11  ;;  %v3117_v18 = vld [vmem:[#allocation2 + $0x50] ss:$8 sps:$4 sm:$0x3f]   ;;  %vm1757_vm7 = vcmask 162816  }
  0x15   :  { %v73_v16 = vpack.c.bf16 %v67_v14, %v66_v13  ;;  %v84_v20 = vld [vmem:[%s4227_s0 + $0x19] sm:$0xff]  ;;  %v68_v21 = vld [vmem:[%s4227_s0 + $0x10] sm:$0xff]  ;;  %v360_v23 = vsel %vm128_vm0, %v3117_v18, 0  ;;  %v3123_v27 = vld [vmem:[#allocation2 + $0x44] ss:$8 sps:$4 sm:$0xff]   ;;  %vm3356_vm8 = vmmov 0  }
  0x16   :  { %150 = vmatpush1.bf16.msra.mxu0 %v3113_v9  ;;  %257 = vmatpush1.bf16.msra.mxu1 %v3114_v10  ;;  %v69_v22 = vld [vmem:[%s4227_s0 + $0x18] sm:$0xff]  ;;  %v3121_v26 = vld [vmem:[#allocation2 + $0x40] ss:$8 sps:$4 sm:$0xff]   ;;  %v3126_v29 = vld [vmem:[#allocation2 + $0x64] ss:$8 sps:$4 sm:$0xff]   ;;  %v89_v30 = vpack.c.bf16 %v84_v20, %v83_v19  ;;  %vm2399_vm9 = vcmask 1043456  }
  0x17   :  { %2582 = vmatprep.subr.msk.bf16.mxu0 %vm128_vm0, %v3115_v17  ;;  %v3118_v24 = vld [vmem:[#allocation2 + $0x74] ss:$8 sps:$4 sm:$0x3f]   ;;  %v3120_v25 = vld [vmem:[#allocation2 + $0x70] ss:$8 sps:$4 sm:$0x3f]   ;;  %v74_v31 = vpack.c.bf16 %v69_v22, %v68_v21 }
  0x18   :  { %2591 = vmatprep.subr.msk.bf16.mxu1 %vm128_vm0, %v3118_v24  ;;  %v497_v28 = vsel %vm128_vm0, %v3120_v25, 0  ;;  %v3124_v32 = vld [vmem:[#allocation2 + $0x60] ss:$8 sps:$4 sm:$0xff]   ;;  %v3127_v33 = vld [vmem:[#allocation2 + $0x94] ss:$8 sps:$4 sm:$0x3f]  }
  0x19   :  { %2565 = vmatmul.mubr.msk.bf16.vlgmr.msra.gmra.mxu0 %vm115_vm1, %v88_v15  ;;  %2574 = vmatmul.mubr.msk.bf16.vlgmr.msra.gmra.mxu1 %vm115_vm1, %v73_v16  ;;  %v85_v34 = vld [vmem:[%s4227_s0 + $0x21] sm:$0xff]  ;;  %v86_v35 = vld [vmem:[%s4227_s0 + $0x29] sm:$0xff]  ;;  %v87_v40 = vld [vmem:[%s4227_s0 + $0x31] sm:$0xf]  ;;  %vm948_vm4 = vsmask.f32 7424 }
  0x1a   :  { %177 = vmatprep.mubr.bf16.mxu0 %v3354_v0  ;;  %284 = vmatprep.mubr.bf16.mxu1 %v3354_v0  ;;  %v70_v36 = vld [vmem:[%s4227_s0 + $0x20] sm:$0xff]  ;;  %v71_v37 = vld [vmem:[%s4227_s0 + $0x28] sm:$0xff]  ;;  %v90_v38 = vpack.c.bf16 %v86_v35, %v85_v34  ;;  %v72_v41 = vld [vmem:[%s4227_s0 + $0x30] sm:$0xf]  ;;  %v91_v42 = vpack.c.bf16 %v87_v40, %v87_v40  ;;  %vm1407_vm5 = vsmask.f32 6400 }
  0x1b   :  { %378 = vmatpush1.bf16.msra.mxu0 %v360_v23  ;;  %515 = vmatpush1.bf16.msra.mxu1 %v497_v28  ;;  %v75_v39 = vpack.c.bf16 %v71_v37, %v70_v36  ;;  %v76_v43 = vpack.c.bf16 %v72_v41, %v72_v41  ;;  %v313_v44 = vld [vmem:[%s4227_s0 + $0x2] sm:$0xff]  ;;  %v314_v45 = vld [vmem:[%s4227_s0 + $0xa] sm:$0xff]  ;;  %v315_v52 = vld [vmem:[%s4227_s0 + $0x12] sm:$0xff]  ;;  %vm2395_vm10 = vcmask 982016   ;;  %vm2496_vm11 = vcmask 687104   ;;  %s3357_s28 = smov [#allocation5]  }
  0x1c   :  { %379 = vmatprep.subr.bf16.mxu0 %v3123_v27  ;;  %516 = vmatprep.subr.bf16.mxu1 %v3126_v29  ;;  %v450_v46 = vld [vmem:[%s4227_s0 + $0x3] sm:$0xff]  ;;  %v451_v47 = vld [vmem:[%s4227_s0 + $0xb] sm:$0xff]  ;;  %v320_v49 = vpack.c.bf16 %v314_v45, %v313_v44  ;;  %v316_v53 = vld [vmem:[%s4227_s0 + $0x1a] sm:$0xff]  ;;  %vm2543_vm12 = vcmask 74752  }
  0x1d   :  { %v3129_v48 = vld [vmem:[#allocation2 + $0x90] ss:$8 sps:$4 sm:$0x3f]   ;;  %v457_v50 = vpack.c.bf16 %v451_v47, %v450_v46  ;;  %v3132_v51 = vld [vmem:[#allocation2 + $0x84] ss:$8 sps:$4 sm:$0xff]   ;;  %v453_v55 = vld [vmem:[%s4227_s0 + $0x1b] sm:$0xff]  ;;  %v321_v58 = vpack.c.bf16 %v316_v53, %v315_v52 }
  0x1e   :  { %v452_v54 = vld [vmem:[%s4227_s0 + $0x13] sm:$0xff]  ;;  %v634_v56 = vsel %vm128_vm0, %v3129_v48, 0  ;;  %v3130_v57 = vld [vmem:[#allocation2 + $0x80] ss:$8 sps:$4 sm:$0xff]  }
  0x1f   :  { %380 = vmatpush1.bf16.msra.mxu0 %v3121_v26  ;;  %517 = vmatpush1.bf16.msra.mxu1 %v3124_v32  ;;  %v458_v59 = vpack.c.bf16 %v453_v55, %v452_v54  ;;  %v317_v60 = vld [vmem:[%s4227_s0 + $0x22] sm:$0xff]  ;;  %v318_v61 = vld [vmem:[%s4227_s0 + $0x2a] sm:$0xff]  ;;  %v319_v3 = vld [vmem:[%s4227_s0 + $0x32] sm:$0xf] }
  0x20   :  { %2600 = vmatprep.subr.msk.bf16.mxu0 %vm128_vm0, %v3127_v33  ;;  %v454_v62 = vld [vmem:[%s4227_s0 + $0x23] sm:$0xff]  ;;  %v455_v63 = vld [vmem:[%s4227_s0 + $0x2b] sm:$0xff]  ;;  %v322_v1 = vpack.c.bf16 %v318_v61, %v317_v60  ;;  %v456_v4 = vld [vmem:[%s4227_s0 + $0x33] sm:$0xf]  ;;  %v323_v5 = vpack.c.bf16 %v319_v3, %v319_v3 }
  0x21   :  { %2566 = vmatmul.mubr.msk.bf16.gmra.mxu0 %vm115_vm1, %v89_v30  ;;  %2575 = vmatmul.mubr.msk.bf16.gmra.mxu1 %vm115_vm1, %v74_v31  ;;  %v459_v2 = vpack.c.bf16 %v455_v63, %v454_v62  ;;  %v460_v6 = vpack.c.bf16 %v456_v4, %v456_v4  ;;  %v587_v7 = vld [vmem:[%s4227_s0 + $0x4] sm:$0xff]  ;;  %v588_v8 = vld [vmem:[%s4227_s0 + $0xc] sm:$0xff]  ;;  %v589_v10 = vld [vmem:[%s4227_s0 + $0x14] sm:$0xff] }
  0x22   :  { %187 = vmatprep.mubr.bf16.mxu0 %v3354_v0  ;;  %294 = vmatprep.mubr.bf16.mxu1 %v3354_v0  ;;  %v594_v9 = vpack.c.bf16 %v588_v8, %v587_v7  ;;  %v590_v11 = vld [vmem:[%s4227_s0 + $0x1c] sm:$0xff]  ;;  %v591_v13 = vld [vmem:[%s4227_s0 + $0x24] sm:$0xff]  ;;  %v592_v14 = vld [vmem:[%s4227_s0 + $0x2c] sm:$0xff] }
  0x23   :  { %v595_v12 = vpack.c.bf16 %v590_v11, %v589_v10  ;;  %v596_v15 = vpack.c.bf16 %v592_v14, %v591_v13  ;;  %v593_v16 = vld [vmem:[%s4227_s0 + $0x34] sm:$0xf]  ;;  %v3133_v18 = vld [vmem:[%s4230_s3] sm:$0xff]   ;;  %v3143_v36 = vld [vmem:[%s4232_s5 + $0xf0] ss:$8 sps:$4 sm:$0xff]  }
  0x24   :  { %v597_v17 = vpack.c.bf16 %v593_v16, %v593_v16  ;;  %v3145_v37 = vld [vmem:[%s4232_s5 + $0xf4] ss:$8 sps:$4 sm:$0xff]  }
  0x29   :  { %2567 = vmatmul.mubr.msk.bf16.gmra.mxu0 %vm115_vm1, %v90_v38  ;;  %2576 = vmatmul.mubr.msk.bf16.gmra.mxu1 %vm115_vm1, %v75_v39 }
  0x2a   :  { %197 = vmatprep.mubr.bf16.mxu0 %v3354_v0  ;;  %304 = vmatprep.mubr.bf16.mxu1 %v3354_v0 }
  0x31   :  { %2568 = vmatmul.mubr.msk.bf16.gmra.mxu0 %vm115_vm1, %v91_v42  ;;  %2577 = vmatmul.mubr.msk.bf16.gmra.mxu1 %vm115_vm1, %v76_v43 }
  0x32   :  { %397 = vmatprep.mubr.bf16.mxu0 %v3354_v0  ;;  %534 = vmatprep.mubr.bf16.mxu1 %v3354_v0 }
  0x39   :  { %2583 = vmatmul.mubr.msk.bf16.vlgmr.msra.gmra.mxu0 %vm115_vm1, %v320_v49  ;;  %2592 = vmatmul.mubr.msk.bf16.vlgmr.msra.gmra.mxu1 %vm115_vm1, %v457_v50 }
  0x3a   :  { %407 = vmatprep.mubr.bf16.mxu0 %v3354_v0  ;;  %544 = vmatprep.mubr.bf16.mxu1 %v3354_v0 }
  0x3b   :  { %652 = vmatpush1.bf16.msra.mxu0 %v634_v56 }
  0x3c   :  { %653 = vmatprep.subr.bf16.mxu0 %v3132_v51 }
  0x3f   :  { %654 = vmatpush1.bf16.msra.mxu0 %v3130_v57 }
  0x40   :  { %1046 = vmatprep.subr.bf16.mxu0 %v3145_v37 }
  0x41   :  { %2584 = vmatmul.mubr.msk.bf16.gmra.mxu0 %vm115_vm1, %v321_v58  ;;  %2593 = vmatmul.mubr.msk.bf16.gmra.mxu1 %vm115_vm1, %v458_v59 }
  0x42   :  { %417 = vmatprep.mubr.bf16.mxu0 %v3354_v0  ;;  %554 = vmatprep.mubr.bf16.mxu1 %v3354_v0 }
  0x49   :  { %2585 = vmatmul.mubr.msk.bf16.gmra.mxu0 %vm115_vm1, %v322_v1  ;;  %2594 = vmatmul.mubr.msk.bf16.gmra.mxu1 %vm115_vm1, %v459_v2 }
  0x4a   :  { %427 = vmatprep.mubr.bf16.mxu0 %v3354_v0  ;;  %564 = vmatprep.mubr.bf16.mxu1 %v3354_v0 }
  0x51   :  { %2586 = vmatmul.mubr.msk.bf16.gmra.mxu0 %vm115_vm1, %v323_v5  ;;  %2595 = vmatmul.mubr.msk.bf16.gmra.mxu1 %vm115_vm1, %v460_v6 }
  0x52   :  { %671 = vmatprep.mubr.bf16.mxu0 %v3354_v0  ;;  %2944 = vmatprep.mubr.msk.bf16.mxu1 %vm786_vm2, %v3133_v18 }
  0x59   :  { %2601 = vmatmul.mubr.msk.bf16.vlgmr.msra.gmra.mxu0 %vm115_vm1, %v594_v9 }
  0x5a   :  { %681 = vmatprep.mubr.bf16.mxu0 %v3354_v0  ;;  %1047 = vmatpush1.bf16.msra.mxu0 %v3143_v36 }
  0x61   :  { %2602 = vmatmul.mubr.msk.bf16.gmra.mxu0 %vm115_vm1, %v595_v12 }
  0x62   :  { %691 = vmatprep.mubr.bf16.mxu0 %v3354_v0 }
  0x69   :  { %2603 = vmatmul.mubr.msk.bf16.gmra.mxu0 %vm115_vm1, %v596_v15 }
  0x6a   :  { %701 = vmatprep.mubr.bf16.mxu0 %v3354_v0 }
  0x71   :  { %2604 = vmatmul.mubr.msk.bf16.gmra.mxu0 %vm115_vm1, %v597_v17 }
  0x72   :  { %1078 = vmatprep.mubr.bf16.mxu0 %v3354_v0 }
  0xd9   :  { %v169_v19 = vpop.f32.mrf.mxu0  ;;  %v276_v20 = vpop.f32.mrf.mxu1 }
  0xda   :  { %v277_v21 = vadd.f32 %v276_v20, %v169_v19 }
  0xdb   :  { %v171_v22 = vpop.f32.mrf.mxu0  ;;  %v278_v23 = vpop.f32.mrf.mxu1 }
  0xdc   :  { %v279_v24 = vadd.f32 %v278_v23, %v171_v22 }
  0xdd   :  { %v173_v25 = vpop.f32.mrf.mxu0  ;;  %v280_v26 = vpop.f32.mrf.mxu1 }
  0xde   :  { %v3601_v27 = vadd.f32 %v280_v26, %v173_v25 }
  0xdf   :  { %v175_v28 = vpop.f32.mrf.mxu0  ;;  %v282_v29 = vpop.f32.mrf.mxu1 }
  0xe0   :  { %v3603_v30 = vadd.f32 %v282_v29, %v175_v28 }
  0xe1   :  { %v179_v31 = vpop.f32.mrf.mxu0  ;;  %v286_v32 = vpop.f32.mrf.mxu1 }
  0xe2   :  { %v3605_v33 = vadd.f32 %v286_v32, %v179_v31 }
  0xe3   :  { %v181_v34 = vpop.f32.mrf.mxu0  ;;  %v288_v35 = vpop.f32.mrf.mxu1 }
  0xe4   :  { %v3613_v38 = vadd.f32 %v288_v35, %v181_v34 }
  0xe5   :  { %v183_v39 = vpop.f32.mrf.mxu0  ;;  %v290_v40 = vpop.f32.mrf.mxu1 }
  0xe6   :  { %v3615_v41 = vadd.f32 %v290_v40, %v183_v39 }
  0xe7   :  { %v185_v42 = vpop.f32.mrf.mxu0  ;;  %v292_v43 = vpop.f32.mrf.mxu1 }
  0xe8   :  { %v3617_v44 = vadd.f32 %v292_v43, %v185_v42  ;;  %v724_v43 = vld [vmem:[%s4229_s2] sm:$0x3] }
  0xe9   :  { %v189_v45 = vpop.f32.mrf.mxu0  ;;  %v296_v46 = vpop.f32.mrf.mxu1 }
  0xea   :  { %v3619_v47 = vadd.f32 %v296_v46, %v189_v45 }
  0xeb   :  { %v191_v48 = vpop.f32.mrf.mxu0  ;;  %v298_v49 = vpop.f32.mrf.mxu1 }
  0xec   :  { %v3621_v50 = vadd.f32 %v298_v49, %v191_v48 }
  0xed   :  { %v193_v51 = vpop.f32.mrf.mxu0  ;;  %v300_v52 = vpop.f32.mrf.mxu1 }
  0xee   :  { %v3623_v53 = vadd.f32 %v300_v52, %v193_v51 }
  0xef   :  { %v195_v54 = vpop.f32.mrf.mxu0  ;;  %v302_v55 = vpop.f32.mrf.mxu1 }
  0xf0   :  { %v3625_v56 = vadd.f32 %v302_v55, %v195_v54 }
  0xf1   :  { %v3627_v57 = vpop.f32.mrf.mxu0  ;;  %v3629_v58 = vpop.f32.mrf.mxu1 }
  0xf3   :  { %v3631_v59 = vpop.f32.mrf.mxu0  ;;  %v3633_v60 = vpop.f32.mrf.mxu1 }
  0xf5   :  { %v203_v61 = vpop.f32.mrf.mxu0  ;;  %v310_v62 = vpop.f32.mrf.mxu1 }
  0xf7   :  { %v204_v63 = vpop.f32.mrf.mxu0  ;;  %v311_v1 = vpop.f32.mrf.mxu1 }
  0xf9   :  { %v399_v2 = vpop.f32.mrf.mxu0  ;;  %v536_v3 = vpop.f32.mrf.mxu1 }
  0xfa   :  { %v436_v4 = vadd.f32 %v399_v2, %v277_v21 }
  0xfb   :  { %v401_v5 = vpop.f32.mrf.mxu0  ;;  %v538_v6 = vpop.f32.mrf.mxu1 }
  0xfc   :  { %v437_v7 = vadd.f32 %v401_v5, %v279_v24  ;;  %v573_v8 = vadd.f32 %v536_v3, %v436_v4  ;;  %v726_v24 = vlaneseq }
  0xfd   :  { %v403_v9 = vpop.f32.mrf.mxu0  ;;  %v540_v10 = vpop.f32.mrf.mxu1 }
  0xfe   :  { %v574_v11 = vadd.f32 %v538_v6, %v437_v7  ;;  %v3643_v34 = vshrl.u32 %v726_v24, 7  ;;  %v438_v51 = vadd.f32 %v403_v9, %v3601_v27 }
  0xff   :  { %v405_v12 = vpop.f32.mrf.mxu0  ;;  %v542_v13 = vpop.f32.mrf.mxu1 }
 0x100   :  { %v728_v40 = vsub.s32 0, %v3643_v34  ;;  %v732_v46 = vsub.s32 1, %v3643_v34  ;;  %v439_v55 = vadd.f32 %v405_v12, %v3603_v30  ;;  %v575_v2 = vadd.f32 %v540_v10, %v438_v51 }
 0x101   :  { %v409_v14 = vpop.f32.mrf.mxu0  ;;  %v546_v15 = vpop.f32.mrf.mxu1 }
 0x102   :  { %v3661_v52 = vrot.slane %v724_v43, %v728_v40  ;;  %v3666_v62 = vrot.slane %v724_v43, %v732_v46  ;;  %v440_v63 = vadd.f32 %v409_v14, %v3605_v33  ;;  %v576_v5 = vadd.f32 %v542_v13, %v439_v55 }
 0x103   :  { %v411_v16 = vpop.f32.mrf.mxu0  ;;  %v548_v17 = vpop.f32.mrf.mxu1 }
 0x104   :  { %v441_v6 = vadd.f32 %v411_v16, %v3613_v38  ;;  %v577_v30 = vadd.f32 %v546_v15, %v440_v63 }
 0x105   :  { %v413_v18 = vpop.f32.mrf.mxu0  ;;  %v550_v19 = vpop.f32.mrf.mxu1 }
 0x107   :  { %v415_v20 = vpop.f32.mrf.mxu0  ;;  %v552_v22 = vpop.f32.mrf.mxu1 }
 0x108   :  { %v443_v10 = vadd.f32 %v415_v20, %v3617_v44 }
 0x109   :  { %v419_v23 = vpop.f32.mrf.mxu0  ;;  %v556_v25 = vpop.f32.mrf.mxu1 }
 0x10b   :  { %v421_v21 = vpop.f32.mrf.mxu0  ;;  %v3635_v26 = vpop.f32.mrf.mxu1 }
 0x10d   :  { %v423_v28 = vpop.f32.mrf.mxu0  ;;  %v3637_v29 = vpop.f32.mrf.mxu1 }
 0x10f   :  { %v3639_v31 = vpop.f32.mrf.mxu0  ;;  %v3641_v32 = vpop.f32.mrf.mxu1 }
 0x111   :  { %v3645_v35 = vpop.f32.mrf.mxu0  ;;  %v3647_v36 = vpop.f32.mrf.mxu1 }
 0x113   :  { %v3649_v37 = vpop.f32.mrf.mxu0  ;;  %v3651_v39 = vpop.f32.mrf.mxu1 }
 0x115   :  { %v433_v42 = vpop.f32.mrf.mxu0  ;;  %v570_v45 = vpop.f32.mrf.mxu1 }
 0x117   :  { %v434_v48 = vpop.f32.mrf.mxu0  ;;  %v571_v49 = vpop.f32.mrf.mxu1 }
 0x118   :  { %v444_v48 = vadd.f32 %v419_v23, %v3619_v47 }
 0x119   :  { %v673_v54 = vpop.f32.mrf.mxu0 }
 0x11a   :  { %v710_v61 = vadd.f32 %v673_v54, %v573_v8  ;;  %v442_v8 = vadd.f32 %v413_v18, %v3615_v41  ;;  %v580_v54 = vadd.f32 %v552_v22, %v443_v10  ;;  %v581_v63 = vadd.f32 %v556_v25, %v444_v48 }
 0x11b   :  { %v675_v1 = vpop.f32.mrf.mxu0  ;;  %v307_v22 = vadd.f32 %v3629_v58, %v3627_v57 }
 0x11c   :  { %v736_v3 = vadd.f32 %v3661_v52, %v710_v61  ;;  %v711_v4 = vadd.f32 %v675_v1, %v574_v11  ;;  %v578_v11 = vadd.f32 %v548_v17, %v441_v6  ;;  %v579_v16 = vadd.f32 %v550_v19, %v442_v8 }
 0x11d   :  { %v677_v27 = vpop.f32.mrf.mxu0  ;;  %v445_v61 = vadd.f32 %v421_v21, %v3621_v50  ;;  %v446_v1 = vadd.f32 %v423_v28, %v3623_v53  ;;  %v447_v50 = vadd.f32 %v3639_v31, %v3625_v56 }
 0x11e   :  { %v737_v7 = vadd.f32 %v3666_v62, %v711_v4  ;;  %v712_v9 = vadd.f32 %v677_v27, %v575_v2  ;;  %v750_v24 = vmax.f32 %v736_v3, 0.0 }
 0x11f   :  { %v679_v12 = vpop.f32.mrf.mxu0  ;;  %v582_v27 = vadd.f32 %v3635_v26, %v445_v61  ;;  %v583_v6 = vadd.f32 %v3637_v29, %v446_v1  ;;  %v584_v31 = vadd.f32 %v3641_v32, %v447_v50  ;;  %v3142_v1 = vld [vmem:[%s4232_s5 + $0x64] ss:$8 sps:$4 sm:$0xff]   ;;  %v3155_v50 = vld [vmem:[%s4232_s5 + $0xd0] ss:$8 sps:$4 sm:$0xff]  }
 0x120   :  { %v751_v42 = vmax.f32 %v737_v7, 0.0  ;;  %v738_v33 = vadd.f32 %v3661_v52, %v712_v9  ;;  %v713_v14 = vadd.f32 %v679_v12, %v576_v5  ;;  %v309_v5 = vadd.f32 %v3633_v60, %v3631_v59 }
 0x121   :  { %v683_v43 = vpop.f32.mrf.mxu0  ;;  %v448_v7 = vadd.f32 %v3645_v35, %v307_v22  ;;  %v3154_v22 = vld [vmem:[%s4232_s5 + $0x44] ss:$8 sps:$4 sm:$0xff]  }
 0x122   :  { %v764_v45 = vmax.f32 %v750_v24, %v751_v42  ;;  %v739_v13 = vadd.f32 %v3666_v62, %v713_v14  ;;  %v714_v38 = vadd.f32 %v683_v43, %v577_v30  ;;  %v752_v49 = vmax.f32 %v738_v33, 0.0 }
 0x123   :  { %v685_v15 = vpop.f32.mrf.mxu0  ;;  %v449_v8 = vadd.f32 %v3649_v37, %v309_v5  ;;  %v585_v59 = vadd.f32 %v3647_v36, %v448_v7  ;;  %v3161_v5 = vld [vmem:[%s4232_s5 + $0xc0] ss:$8 sps:$4 sm:$0xff]   ;;  %v3169_v7 = vld [vmem:[%s4232_s5 + $0xb4] ss:$8 sps:$4 sm:$0xff]  }
 0x124   :  { %v753_v41 = vmax.f32 %v739_v13, 0.0  ;;  %v740_v18 = vadd.f32 %v3661_v52, %v714_v38  ;;  %v715_v51 = vadd.f32 %v685_v15, %v578_v11 }
 0x125   :  { %v687_v55 = vpop.f32.mrf.mxu0  ;;  %v586_v11 = vadd.f32 %v3651_v39, %v449_v8  ;;  %v3181_v8 = vld [vmem:[%s4232_s5 + $0x94] ss:$8 sps:$4 sm:$0xff]  }
 0x126   :  { %v765_v44 = vmax.f32 %v752_v49, %v753_v41  ;;  %v741_v17 = vadd.f32 %v3666_v62, %v715_v51  ;;  %v716_v20 = vadd.f32 %v687_v55, %v579_v16  ;;  %v754_v19 = vmax.f32 %v740_v18, 0.0 }
 0x127   :  { %v689_v2 = vpop.f32.mrf.mxu0 }
 0x128   :  { %v3681_v47 = vpack.c.bf16 %v765_v44, %v764_v45  ;;  %v755_v23 = vmax.f32 %v741_v17, 0.0  ;;  %v742_v3 = vadd.f32 %v3661_v52, %v716_v20  ;;  %v717_v4 = vadd.f32 %v689_v2, %v580_v54  ;;  %v3139_v17 = vld [vmem:[%s4232_s5 + $0x74] ss:$8 sps:$4 sm:$0xff]   ;;  %v3136_v20 = vld [vmem:[%s4231_s4 + $0x8] ss:$0 sps:$4 sm:$0xff]  }
 0x129   :  { %v693_v21 = vpop.f32.mrf.mxu0  ;;  %v3146_v2 = vld [vmem:[%s4232_s5 + $0x50] ss:$8 sps:$4 sm:$0xff]  }
 0x12a   :  { %v766_v25 = vmax.f32 %v754_v19, %v755_v23  ;;  %v743_v53 = vadd.f32 %v3666_v62, %v717_v4  ;;  %v718_v28 = vadd.f32 %v693_v21, %v581_v63  ;;  %v756_v30 = vmax.f32 %v742_v3, 0.0  ;;  %v3137_v63 = vld [vmem:[%s4232_s5 + $0x70] ss:$8 sps:$4 sm:$0xff]   ;;  %v3140_v19 = vld [vmem:[%s4232_s5 + $0x60] ss:$8 sps:$4 sm:$0xff]  }
 0x12b   :  { %v695_v9 = vpop.f32.mrf.mxu0  ;;  %v3149_v23 = vld [vmem:[%s4232_s5 + $0xe0] ss:$8 sps:$4 sm:$0xff]   ;;  %v3151_v3 = vld [vmem:[%s4232_s5 + $0xe4] ss:$8 sps:$4 sm:$0xff]   ;;  %v3157_v21 = vld [vmem:[%s4232_s5 + $0xd4] ss:$8 sps:$4 sm:$0xff]  }
 0x12c   :  { %v757_v57 = vmax.f32 %v743_v53, 0.0  ;;  %v744_v58 = vadd.f32 %v3661_v52, %v718_v28  ;;  %v719_v56 = vadd.f32 %v695_v9, %v582_v27  ;;  %1048 = vmatprep.subr.bf16.mxu0 %v3151_v3  ;;  %v3152_v4 = vld [vmem:[%s4232_s5 + $0x40] ss:$8 sps:$4 sm:$0xff]   ;;  %v3158_v27 = vld [vmem:[%s4232_s5 + $0x30] ss:$8 sps:$4 sm:$0xff]  }
 0x12d   :  { %v697_v26 = vpop.f32.mrf.mxu0  ;;  %1049 = vmatpush1.bf16.msra.mxu0 %v3149_v23  ;;  %v3163_v53 = vld [vmem:[%s4232_s5 + $0xc4] ss:$8 sps:$4 sm:$0xff]   ;;  %v3167_v9 = vld [vmem:[%s4232_s5 + $0xb0] ss:$8 sps:$4 sm:$0xff]   ;;  %v3208_v23 = vld [vmem:[%s4232_s5 + $0x1b4] ss:$8 sps:$4 sm:$0xff]  }
 0x12e   :  { %v767_v12 = vmax.f32 %v756_v30, %v757_v57  ;;  %v745_v24 = vadd.f32 %v3666_v62, %v719_v56  ;;  %v720_v42 = vadd.f32 %v697_v26, %v583_v6  ;;  %v758_v60 = vmax.f32 %v744_v58, 0.0  ;;  %1050 = vmatprep.subr.bf16.mxu0 %v3157_v21  ;;  %v3166_v28 = vld [vmem:[%s4232_s5 + $0x24] ss:$8 sps:$4 sm:$0xff]   ;;  %v3164_v6 = vld [vmem:[%s4232_s5 + $0x20] ss:$8 sps:$4 sm:$0xff]  }
 0x12f   :  { %v699_v29 = vpop.f32.mrf.mxu0  ;;  %v3172_v30 = vld [vmem:[%s4232_s5 + $0x14] ss:$8 sps:$4 sm:$0xff]   ;;  %v3170_v57 = vld [vmem:[%s4232_s5 + $0x10] ss:$8 sps:$4 sm:$0xff]   ;;  %v3175_v58 = vld [vmem:[%s4232_s5 + $0xa4] ss:$8 sps:$4 sm:$0xff]  }
 0x130   :  { %v772_v35 = vpack.c.bf16 %v767_v12, %v766_v25  ;;  %v759_v33 = vmax.f32 %v745_v24, 0.0  ;;  %v746_v14 = vadd.f32 %v3661_v52, %v720_v42  ;;  %v721_v10 = vadd.f32 %v699_v29, %v584_v31  ;;  %v3160_v25 = vld [vmem:[%s4232_s5 + $0x34] ss:$8 sps:$4 sm:$0xff]   ;;  %v3173_v56 = vld [vmem:[%s4232_s5 + $0xa0] ss:$8 sps:$4 sm:$0xff]  }
 0x131   :  { %v703_v43 = vpop.f32.mrf.mxu0  ;;  %1051 = vmatpush1.bf16.msra.mxu0 %v3155_v50  ;;  %v3178_v31 = vld [vmem:[%s4232_s5 + $0x4] ss:$8 sps:$4 sm:$0xff]   ;;  %v3176_v26 = vld [vmem:[%s4232_s5] ss:$8 sps:$4 sm:$0xff]   ;;  %v3179_v12 = vld [vmem:[%s4232_s5 + $0x90] ss:$8 sps:$4 sm:$0xff]  }
 0x132   :  { %v768_v32 = vmax.f32 %v758_v60, %v759_v33  ;;  %v747_v45 = vadd.f32 %v3666_v62, %v721_v10  ;;  %v722_v37 = vadd.f32 %v703_v43, %v585_v59  ;;  %v760_v38 = vmax.f32 %v746_v14, 0.0  ;;  %1052 = vmatprep.subr.bf16.mxu0 %v3163_v53  ;;  %v3184_v24 = vld [vmem:[%s4232_s5 + $0x1f4] ss:$8 sps:$4 sm:$0xff]   ;;  %v3185_v42 = vld [vmem:[%s4232_s5 + $0x80] ss:$8 sps:$4 sm:$0xff]  }
 0x133   :  { %v705_v13 = vpop.f32.mrf.mxu0  ;;  %v3187_v59 = vld [vmem:[%s4232_s5 + $0x84] ss:$8 sps:$4 sm:$0xff]   ;;  %v3193_v60 = vld [vmem:[%s4232_s5 + $0x174] ss:$8 sps:$4 sm:$0xff]   ;;  %v3206_v50 = vld [vmem:[%s4232_s5 + $0x1b0] ss:$8 sps:$4 sm:$0xff]  }
 0x134   :  { %v761_v16 = vmax.f32 %v747_v45, 0.0  ;;  %v748_v48 = vadd.f32 %v3661_v52, %v722_v37  ;;  %v723_v36 = vadd.f32 %v705_v13, %v586_v11  ;;  %v3134_v52 = vld [vmem:[%s4230_s3 + $0x8] ss:$0 sps:$4 sm:$0xff]   ;;  %v3211_v21 = vld [vmem:[%s4232_s5 + $0x144] ss:$8 sps:$4 sm:$0xff]  }
 0x135   :  { %v707_v15 = vpop.f32.mrf.mxu0  ;;  %1053 = vmatpush1.bf16.msra.mxu0 %v3161_v5  ;;  %v3212_v53 = vld [vmem:[%s4232_s5 + $0x1a0] ss:$8 sps:$4 sm:$0xff]   ;;  %v3220_v5 = vld [vmem:[%s4232_s5 + $0x194] ss:$8 sps:$4 sm:$0xff]  }
 0x136   :  { %v769_v49 = vmax.f32 %v760_v38, %v761_v16  ;;  %v749_v41 = vadd.f32 %v3666_v62, %v723_v36  ;;  %v762_v54 = vmax.f32 %v748_v48, 0.0  ;;  %v3135_v62 = vld [vmem:[%s4231_s4] sm:$0xff]   ;;  %1054 = vmatprep.subr.bf16.mxu0 %v3169_v7  ;;  %v3182_v16 = vld [vmem:[%s4232_s5 + $0x1f0] ss:$8 sps:$4 sm:$0xff]  }
 0x137   :  { %v708_v18 = vpop.f32.mrf.mxu0  ;;  %v3190_v36 = vld [vmem:[%s4232_s5 + $0x1e4] ss:$8 sps:$4 sm:$0xff]   ;;  %v3218_v7 = vld [vmem:[%s4232_s5 + $0x190] ss:$8 sps:$4 sm:$0xff]  }
 0x138   :  { %v773_v51 = vpack.c.bf16 %v769_v49, %v768_v32  ;;  %v763_v55 = vmax.f32 %v749_v41, 0.0  ;;  %v3188_v18 = vld [vmem:[%s4232_s5 + $0x1e0] ss:$8 sps:$4 sm:$0xff]  }
 0x139   :  { %1055 = vmatpush1.bf16.msra.mxu0 %v3167_v9  ;;  %v3223_v9 = vld [vmem:[%s4232_s5 + $0x124] ss:$8 sps:$4 sm:$0xff]  }
 0x13a   :  { %v770_v61 = vmax.f32 %v762_v54, %v763_v55  ;;  %1056 = vmatprep.subr.bf16.mxu0 %v3175_v58 }
 0x13c   :  { %v774_v39 = vpack.c.bf16 %v770_v61, %v770_v61  ;;  %v3196_v61 = vld [vmem:[%s4232_s5 + $0x1d4] ss:$8 sps:$4 sm:$0xff]  }
 0x13d   :  { %1057 = vmatpush1.bf16.msra.mxu0 %v3173_v56  ;;  %v3221_v56 = vld [vmem:[%s4232_s5 + $0x120] ss:$8 sps:$4 sm:$0xff]  }
 0x13e   :  { %3092 = vmatprep.subr.msk.bf16.mxu1 %vm793_vm3, %v774_v39  ;;  %v795_v44 = vsel %vm793_vm3, %v774_v39, 0  ;;  %1058 = vmatprep.subr.bf16.mxu0 %v3181_v8  ;;  %v3224_v8 = vld [vmem:[%s4232_s5 + $0x180] ss:$8 sps:$4 sm:$0xff]  }
 0x13f   :  { %2937 = vmatpush3.bf16.msra.mxu1 %v795_v44 }
 0x140   :  { %2938 = vmatprep.subr.bf16.mxu1 %v773_v51 }
 0x141   :  { %1059 = vmatpush1.bf16.msra.mxu0 %v3179_v12  ;;  %v3229_v12 = vld [vmem:[%s4232_s5 + $0x114] ss:$8 sps:$4 sm:$0xff]  }
 0x142   :  { %1060 = vmatprep.subr.bf16.mxu0 %v3187_v59 }
 0x143   :  { %2939 = vmatpush3.bf16.msra.mxu1 %v773_v51 }
 0x144   :  { %2940 = vmatprep.subr.bf16.mxu1 %v772_v35 }
 0x145   :  { %1061 = vmatpush1.bf16.msra.mxu0 %v3185_v42  ;;  %v3227_v42 = vld [vmem:[%s4232_s5 + $0x110] ss:$8 sps:$4 sm:$0xff]  }
 0x146   :  { %1333 = vmatprep.subr.bf16.mxu0 %v3193_v60  ;;  %v3232_v60 = vld [vmem:[%s4232_s5 + $0x104] ss:$8 sps:$4 sm:$0xff]  }
 0x147   :  { %2941 = vmatpush3.bf16.msra.mxu1 %v772_v35 }
 0x148   :  { %2942 = vmatprep.subr.bf16.mxu1 %v3681_v47 }
 0x14b   :  { %2943 = vmatpush3.bf16.msra.mxu1 %v3681_v47 }
 0x14c   :  { %3093 = vmatprep.subr.msk.bf16.mxu1 %vm793_vm3, %v774_v39 }
 0x14e   :  { %2945 = vmatmul.mubr.msk.bf16.vlgmr.msra.gmra.mxu1 %vm786_vm2, %v3134_v52 }
 0x14f   :  { %2949 = vmatpush3.bf16.msra.mxu1 %v795_v44  ;;  %2956 = vmatprep.mubr.msk.bf16.mxu1 %vm786_vm2, %v3135_v62  ;;  %v3191_v44 = vld [vmem:[%s4232_s5 + $0x170] ss:$8 sps:$4 sm:$0xff]  }
 0x150   :  { %2950 = vmatprep.subr.bf16.mxu1 %v773_v51 }
 0x153   :  { %2951 = vmatpush3.bf16.msra.mxu1 %v773_v51 }
 0x154   :  { %2952 = vmatprep.subr.bf16.mxu1 %v772_v35 }
 0x157   :  { %2953 = vmatpush3.bf16.msra.mxu1 %v772_v35 }
 0x158   :  { %2954 = vmatprep.subr.bf16.mxu1 %v3681_v47 }
 0x15b   :  { %2955 = vmatpush3.bf16.msra.mxu1 %v3681_v47  ;;  %v3148_v47 = vld [vmem:[%s4232_s5 + $0x54] ss:$8 sps:$4 sm:$0xff]  }
 0x15c   :  { %1177 = vmatprep.subr.bf16.mxu1 %v3139_v17  ;;  %v3194_v17 = vld [vmem:[%s4232_s5 + $0x1d0] ss:$8 sps:$4 sm:$0xff]  }
 0x15e   :  { %2957 = vmatmul.mubr.msk.bf16.vlgmr.msra.gmra.mxu1 %vm786_vm2, %v3136_v20  ;;  %v3199_v20 = vld [vmem:[%s4232_s5 + $0x164] ss:$8 sps:$4 sm:$0xff]  }
 0x15f   :  { %1178 = vmatpush1.bf16.msra.mxu1 %v3137_v63  ;;  %1209 = vmatprep.mubr.bf16.mxu1 %v3354_v0 }
 0x160   :  { %1179 = vmatprep.subr.bf16.mxu1 %v3142_v1  ;;  %v3202_v1 = vld [vmem:[%s4232_s5 + $0x1c4] ss:$8 sps:$4 sm:$0xff]  }
 0x163   :  { %1180 = vmatpush1.bf16.msra.mxu1 %v3140_v19  ;;  %v3197_v19 = vld [vmem:[%s4232_s5 + $0x160] ss:$8 sps:$4 sm:$0xff]  }
 0x164   :  { %1181 = vmatprep.subr.bf16.mxu1 %v3148_v47  ;;  %v3205_v47 = vld [vmem:[%s4232_s5 + $0x154] ss:$8 sps:$4 sm:$0xff]  }
 0x167   :  { %1182 = vmatpush1.bf16.msra.mxu1 %v3146_v2  ;;  %v3200_v2 = vld [vmem:[%s4232_s5 + $0x1c0] ss:$8 sps:$4 sm:$0xff]  }
 0x168   :  { %1183 = vmatprep.subr.bf16.mxu1 %v3154_v22 }
 0x16b   :  { %1184 = vmatpush1.bf16.msra.mxu1 %v3152_v4  ;;  %v3203_v4 = vld [vmem:[%s4232_s5 + $0x150] ss:$8 sps:$4 sm:$0xff]  }
 0x16c   :  { %1185 = vmatprep.subr.bf16.mxu1 %v3160_v25  ;;  %v3209_v25 = vld [vmem:[%s4232_s5 + $0x140] ss:$8 sps:$4 sm:$0xff]  }
 0x16f   :  { %1186 = vmatpush1.bf16.msra.mxu1 %v3158_v27  ;;  %v3214_v27 = vld [vmem:[%s4232_s5 + $0x1a4] ss:$8 sps:$4 sm:$0xff]  }
 0x170   :  { %1187 = vmatprep.subr.bf16.mxu1 %v3166_v28  ;;  %v3217_v28 = vld [vmem:[%s4232_s5 + $0x134] ss:$8 sps:$4 sm:$0xff]  }
 0x173   :  { %1188 = vmatpush1.bf16.msra.mxu1 %v3164_v6  ;;  %v3215_v6 = vld [vmem:[%s4232_s5 + $0x130] ss:$8 sps:$4 sm:$0xff]  }
 0x174   :  { %1189 = vmatprep.subr.bf16.mxu1 %v3172_v30  ;;  %v3226_v30 = vld [vmem:[%s4232_s5 + $0x184] ss:$8 sps:$4 sm:$0xff]  }
 0x177   :  { %1190 = vmatpush1.bf16.msra.mxu1 %v3170_v57 }
 0x178   :  { %1191 = vmatprep.subr.bf16.mxu1 %v3178_v31 }
 0x17b   :  { %1192 = vmatpush1.bf16.msra.mxu1 %v3176_v26 }
 0x17c   :  { %1497 = vmatprep.subr.bf16.mxu1 %v3184_v24 }
 0x20e   :  { %v2946_v29 = vpop.f32.mrf.mxu1 }
 0x210   :  { %v831_v35 = vpop.f32.mrf.mxu1 }
 0x212   :  { %v2947_v33 = vpop.f32.mrf.mxu1 }
 0x213   :  { %v3235_v33 = vld [vmem:[%s4232_s5 + $0x274] ss:$8 sps:$4 sm:$0xff]  }
 0x214   :  { %v834_v14 = vpop.f32.mrf.mxu1 }
 0x21e   :  { %v2958_v10 = vpop.f32.mrf.mxu1 }
 0x21f   :  { %v912_v11 = vmax.f32 %v2946_v29, %v2958_v10 }
 0x220   :  { %v896_v43 = vpop.f32.mrf.mxu1 }
 0x221   :  { %v3820_v37 = vpack.c.bf16 %v912_v11, %v912_v11  ;;  %v910_v13 = vmax.f32 %v831_v35, %v896_v43  ;;  %v3230_v35 = vld [vmem:[%s4232_s5 + $0x100] ss:$8 sps:$4 sm:$0xff]   ;;  %v3233_v43 = vld [vmem:[%s4232_s5 + $0x270] ss:$8 sps:$4 sm:$0xff]   ;;  %v3238_v11 = vld [vmem:[%s4232_s5 + $0x264] ss:$8 sps:$4 sm:$0xff]  }
 0x222   :  { %v2959_v32 = vpop.f32.mrf.mxu1 }
 0x223   :  { %v957_v49 = vshll.u32 %v3820_v37, 16  ;;  %v1573_v51 = vrot.slane %v3820_v37, 2  ;;  %v961_v3 = vshrl.u32 %v3820_v37, 16  ;;  %v1249_v10 = vrot.slane %v3820_v37, 1 }
 0x224   :  { %v899_v45 = vpop.f32.mrf.mxu1 }
 0x225   :  { %v911_v38 = vmax.f32 %v834_v14, %v899_v45  ;;  %v959_v62 = vrot.slane %v957_v49, 1  ;;  %v1411_v31 = vrot.slane %v961_v3, 1  ;;  %v1412_v26 = vrot.slane %v957_v49, 2  ;;  %v3236_v45 = vld [vmem:[%s4232_s5 + $0x260] ss:$8 sps:$4 sm:$0xff]  }
 0x226   :  { %v3250_v49 = vld [vmem:[%s4232_s5 + $0x224] ss:$8 sps:$4 sm:$0xff]  }
 0x227   :  { %v3825_v48 = vpack.c.bf16 %v911_v38, %v910_v13  ;;  %v963_v22 = vor.u32 %v961_v3, %v959_v62  ;;  %v1413_v59 = vor.u32 %v1412_v26, %v1411_v31  ;;  %v3241_v13 = vld [vmem:[%s4232_s5 + $0x254] ss:$8 sps:$4 sm:$0xff]   ;;  %v3239_v38 = vld [vmem:[%s4232_s5 + $0x250] ss:$8 sps:$4 sm:$0xff]  }
 0x229   :  { %1210 = vmatmul.mubr.bf16.vlgmr.msra.gmra.mxu1 %v3825_v48  ;;  %v952_v15 = vshll.u32 %v3825_v48, 16  ;;  %v1572_v41 = vrot.slane %v3825_v48, 2  ;;  %v950_v54 = vshrl.u32 %v3825_v48, 16  ;;  %v1248_v14 = vrot.slane %v3825_v48, 1  ;;  %v3242_v48 = vld [vmem:[%s4232_s5 + $0x240] ss:$8 sps:$4 sm:$0xff]  }
 0x22a   :  { %1498 = vmatpush1.bf16.msra.mxu1 %v3182_v16  ;;  %1219 = vmatprep.mubr.bf16.mxu1 %v3354_v0  ;;  %v3244_v16 = vld [vmem:[%s4232_s5 + $0x244] ss:$8 sps:$4 sm:$0xff]  }
 0x22b   :  { %1499 = vmatprep.subr.bf16.mxu1 %v3190_v36  ;;  %v954_v55 = vrot.slane %v952_v15, 1  ;;  %v3846_v39 = vsel %vm128_vm0, %v1572_v41, %v1573_v51  ;;  %v1408_v57 = vrot.slane %v950_v54, 1  ;;  %v1409_v58 = vrot.slane %v952_v15, 2  ;;  %v3247_v36 = vld [vmem:[%s4232_s5 + $0x234] ss:$8 sps:$4 sm:$0xff]  }
 0x22c   :  { %v1250_v32 = vsel %vm1247_vm6, %v1248_v14, %v1249_v10  ;;  %v3245_v15 = vld [vmem:[%s4232_s5 + $0x230] ss:$8 sps:$4 sm:$0xff]   ;;  %v3248_v41 = vld [vmem:[%s4232_s5 + $0x220] ss:$8 sps:$4 sm:$0xff]  }
 0x22d   :  { %v955_v52 = vor.u32 %v954_v55, %v950_v54  ;;  %v1410_v24 = vor.u32 %v1409_v58, %v1408_v57  ;;  %v3251_v54 = vld [vmem:[%s4232_s5 + $0x210] ss:$8 sps:$4 sm:$0xff]   ;;  %v3256_v55 = vld [vmem:[%s4232_s5 + $0x204] ss:$8 sps:$4 sm:$0xff]  }
 0x22e   :  { %1500 = vmatpush1.bf16.msra.mxu1 %v3188_v18  ;;  %v3253_v18 = vld [vmem:[%s4232_s5 + $0x214] ss:$8 sps:$4 sm:$0xff]  }
 0x22f   :  { %v960_v63 = vsel %vm948_vm4, %v955_v52, %v959_v62  ;;  %1501 = vmatprep.subr.bf16.mxu1 %v3196_v61  ;;  %v1414_v29 = vsel %vm1407_vm5, %v1410_v24, %v1413_v59  ;;  %v3254_v61 = vld [vmem:[%s4232_s5 + $0x200] ss:$8 sps:$4 sm:$0xff]   ;;  %v3355_v52 = vmov 0.0   ;;  %v3262_v62 = vld [vmem:[%s4236_s9 + $0x78] sm:$0xff]  }
 0x230   :  { %1079 = vmatmul.mubr.bf16.vlgmr.msra.gmra.mxu0 %v960_v63 }
 0x231   :  { %1334 = vmatpush1.bf16.msra.mxu0 %v3191_v44  ;;  %1220 = vmatmul.mubr.bf16.gmra.mxu1 %v3820_v37  ;;  %v3257_v44 = vld [vmem:[%s4234_s7] sm:$0xff]   ;;  %v3266_v37 = vld [vmem:[%s4236_s9 + $0x68] sm:$0xff]  }
 0x232   :  { %1502 = vmatpush1.bf16.msra.mxu1 %v3194_v17  ;;  %1335 = vmatprep.subr.bf16.mxu0 %v3199_v20 }
 0x233   :  { %1503 = vmatprep.subr.bf16.mxu1 %v3202_v1  ;;  %1088 = vmatprep.mubr.bf16.mxu0 %v3354_v0 }
 0x234   :  { %1529 = vmatprep.mubr.bf16.mxu1 %v3354_v0 }
 0x235   :  { %1336 = vmatpush1.bf16.msra.mxu0 %v3197_v19 }
 0x236   :  { %1504 = vmatpush1.bf16.msra.mxu1 %v3200_v2  ;;  %1337 = vmatprep.subr.bf16.mxu0 %v3205_v47 }
 0x237   :  { %1505 = vmatprep.subr.bf16.mxu1 %v3208_v23 }
 0x238   :  { %1089 = vmatmul.mubr.bf16.gmra.mxu0 %v963_v22 }
 0x239   :  { %1338 = vmatpush1.bf16.msra.mxu0 %v3203_v4  ;;  %1365 = vmatprep.mubr.bf16.mxu0 %v3354_v0 }
 0x23a   :  { %1506 = vmatpush1.bf16.msra.mxu1 %v3206_v50  ;;  %1339 = vmatprep.subr.bf16.mxu0 %v3211_v21 }
 0x23b   :  { %1507 = vmatprep.subr.bf16.mxu1 %v3214_v27 }
 0x23d   :  { %1340 = vmatpush1.bf16.msra.mxu0 %v3209_v25 }
 0x23e   :  { %1508 = vmatpush1.bf16.msra.mxu1 %v3212_v53  ;;  %1341 = vmatprep.subr.bf16.mxu0 %v3217_v28 }
 0x23f   :  { %1509 = vmatprep.subr.bf16.mxu1 %v3220_v5 }
 0x241   :  { %1342 = vmatpush1.bf16.msra.mxu0 %v3215_v6 }
 0x242   :  { %1510 = vmatpush1.bf16.msra.mxu1 %v3218_v7  ;;  %1343 = vmatprep.subr.bf16.mxu0 %v3223_v9 }
 0x243   :  { %1511 = vmatprep.subr.bf16.mxu1 %v3226_v30 }
 0x245   :  { %1344 = vmatpush1.bf16.msra.mxu0 %v3221_v56 }
 0x246   :  { %1512 = vmatpush1.bf16.msra.mxu1 %v3224_v8  ;;  %1345 = vmatprep.subr.bf16.mxu0 %v3229_v12 }
 0x249   :  { %1346 = vmatpush1.bf16.msra.mxu0 %v3227_v42  ;;  %1530 = vmatmul.mubr.bf16.vlgmr.msra.gmra.mxu1 %v1414_v29 }
 0x24a   :  { %1347 = vmatprep.subr.bf16.mxu0 %v3232_v60  ;;  %1539 = vmatprep.mubr.bf16.mxu1 %v3354_v0 }
 0x24d   :  { %1348 = vmatpush1.bf16.msra.mxu0 %v3230_v35 }
 0x24e   :  { %1657 = vmatprep.subr.bf16.mxu0 %v3235_v33  ;;  %v1714_v33 = vld [vmem:[%s4233_s6] sm:$0x3] }
 0x250   :  { %1366 = vmatmul.mubr.bf16.vlgmr.msra.gmra.mxu0 %v1250_v32 }
 0x251   :  { %1540 = vmatmul.mubr.bf16.gmra.mxu1 %v1413_v59  ;;  %1658 = vmatpush1.bf16.msra.mxu0 %v3233_v43 }
 0x252   :  { %1659 = vmatprep.subr.bf16.mxu0 %v3238_v11  ;;  %1375 = vmatprep.mubr.bf16.mxu0 %v3354_v0  ;;  %v1719_v11 = vrot.slane %v1714_v33, %v728_v40 }
 0x253   :  { %2964 = vmatprep.mubr.msk.bf16.mxu1 %vm1757_vm7, %v3257_v44 }
 0x255   :  { %1660 = vmatpush1.bf16.msra.mxu0 %v3236_v45 }
 0x256   :  { %1661 = vmatprep.subr.bf16.mxu0 %v3241_v13 }
 0x258   :  { %1376 = vmatmul.mubr.bf16.gmra.mxu0 %v1249_v10 }
 0x259   :  { %1662 = vmatpush1.bf16.msra.mxu0 %v3239_v38  ;;  %1689 = vmatprep.mubr.bf16.mxu0 %v3354_v0 }
 0x25a   :  { %1663 = vmatprep.subr.bf16.mxu0 %v3244_v16 }
 0x25d   :  { %1664 = vmatpush1.bf16.msra.mxu0 %v3242_v48  ;;  %v1723_v48 = vrot.slane %v1714_v33, %v732_v46  ;;  %v3276_v33 = vld [vmem:[%s4236_s9 + $0x40] sm:$0xff]  }
 0x25e   :  { %1665 = vmatprep.subr.bf16.mxu0 %v3247_v36 }
 0x261   :  { %1666 = vmatpush1.bf16.msra.mxu0 %v3245_v15 }
 0x262   :  { %1667 = vmatprep.subr.bf16.mxu0 %v3250_v49 }
 0x265   :  { %1668 = vmatpush1.bf16.msra.mxu0 %v3248_v41 }
 0x266   :  { %1669 = vmatprep.subr.bf16.mxu0 %v3253_v18 }
 0x269   :  { %1670 = vmatpush1.bf16.msra.mxu0 %v3251_v54 }
 0x26a   :  { %1671 = vmatprep.subr.bf16.mxu0 %v3256_v55 }
 0x26d   :  { %1672 = vmatpush1.bf16.msra.mxu0 %v3254_v61 }
 0x26e   :  { %2976 = vmatprep.subr.bf16.mxu0 %v3355_v52 }
 0x270   :  { %1690 = vmatmul.mubr.bf16.vlgmr.msra.gmra.mxu0 %v3846_v39 }
 0x271   :  { %1699 = vmatprep.mubr.bf16.mxu0 %v3354_v0  ;;  %2977 = vmatpush3.bf16.msra.mxu0 %v3262_v62  ;;  %v3264_v0 = vld [vmem:[%s4236_s9 + $0x70] sm:$0xff]  }
 0x272   :  { %2978 = vmatprep.subr.bf16.mxu0 %v3355_v52 }
 0x275   :  { %2979 = vmatpush3.bf16.msra.mxu0 %v3264_v0 }
 0x276   :  { %2980 = vmatprep.subr.bf16.mxu0 %v3355_v52 }
 0x278   :  { %1700 = vmatmul.mubr.bf16.gmra.mxu0 %v1573_v51 }
 0x279   :  { %2981 = vmatpush3.bf16.msra.mxu0 %v3266_v37  ;;  %2992 = vmatprep.mubr.msk.bf16.mxu0 %vm3356_vm8, %v3355_v52 }
 0x27a   :  { %2982 = vmatprep.subr.bf16.mxu0 %v3355_v52 }
 0x2e9   :  { %v1211_v51 = vpop.f32.mrf.mxu1 }
 0x2eb   :  { %v1213_v39 = vpop.f32.mrf.mxu1 }
 0x2ed   :  { %v1215_v17 = vpop.f32.mrf.mxu1 }
 0x2ef   :  { %v1217_v20 = vpop.f32.mrf.mxu1 }
 0x2f0   :  { %v1080_v63 = vpop.f32.mrf.mxu0 }
 0x2f1   :  { %v1212_v1 = vadd.f32 %v1211_v51, %v1080_v63  ;;  %v1221_v19 = vpop.f32.mrf.mxu1 }
 0x2f2   :  { %v1082_v2 = vpop.f32.mrf.mxu0 }
 0x2f3   :  { %v1214_v47 = vadd.f32 %v1213_v39, %v1082_v2  ;;  %v1223_v23 = vpop.f32.mrf.mxu1 }
 0x2f4   :  { %v1084_v3 = vpop.f32.mrf.mxu0 }
 0x2f5   :  { %v1216_v4 = vadd.f32 %v1215_v17, %v1084_v3  ;;  %v1225_v22 = vpop.f32.mrf.mxu1 }
 0x2f6   :  { %v1086_v50 = vpop.f32.mrf.mxu0 }
 0x2f7   :  { %v1218_v21 = vadd.f32 %v1217_v20, %v1086_v50  ;;  %v1226_v27 = vpop.f32.mrf.mxu1 }
 0x2f8   :  { %v1090_v25 = vpop.f32.mrf.mxu0 }
 0x2f9   :  { %v1222_v32 = vadd.f32 %v1221_v19, %v1090_v25 }
 0x2fa   :  { %v1092_v53 = vpop.f32.mrf.mxu0 }
 0x2fb   :  { %v1224_v49 = vadd.f32 %v1223_v23, %v1092_v53 }
 0x2fc   :  { %v1094_v28 = vpop.f32.mrf.mxu0 }
 0x2fe   :  { %v1095_v5 = vpop.f32.mrf.mxu0 }
 0x309   :  { %v1531_v6 = vpop.f32.mrf.mxu1 }
 0x30b   :  { %v1533_v7 = vpop.f32.mrf.mxu1 }
 0x30d   :  { %v1535_v9 = vpop.f32.mrf.mxu1 }
 0x30f   :  { %v1537_v30 = vpop.f32.mrf.mxu1 }
 0x310   :  { %v1367_v57 = vpop.f32.mrf.mxu0 }
 0x311   :  { %v1541_v58 = vpop.f32.mrf.mxu1  ;;  %v1384_v35 = vadd.f32 %v1367_v57, %v1212_v1  ;;  %v3260_v57 = vld [vmem:[%s4235_s8 + $0x8] sm:$0xff]  }
 0x312   :  { %v1369_v56 = vpop.f32.mrf.mxu0 }
 0x313   :  { %v1543_v31 = vpop.f32.mrf.mxu1  ;;  %v1385_v14 = vadd.f32 %v1369_v56, %v1214_v47  ;;  %v1548_v43 = vadd.f32 %v1531_v6, %v1384_v35  ;;  %v3263_v56 = vld [vmem:[%s4236_s9 + $0x30] sm:$0xff]   ;;  %v3275_v35 = vld [vmem:[%s4236_s9] sm:$0xff]  }
 0x314   :  { %v1371_v26 = vpop.f32.mrf.mxu0 }
 0x315   :  { %v1545_v8 = vpop.f32.mrf.mxu1  ;;  %v1386_v10 = vadd.f32 %v1371_v26, %v1216_v4  ;;  %v1549_v16 = vadd.f32 %v1533_v7, %v1385_v14  ;;  %v3267_v26 = vld [vmem:[%s4236_s9 + $0x20] sm:$0xff]  }
 0x316   :  { %v1373_v12 = vpop.f32.mrf.mxu0  ;;  %v3268_v8 = vld [vmem:[%s4236_s9 + $0x60] sm:$0xff]  }
 0x317   :  { %v1546_v24 = vpop.f32.mrf.mxu1  ;;  %v1387_v13 = vadd.f32 %v1373_v12, %v1218_v21  ;;  %v1550_v54 = vadd.f32 %v1535_v9, %v1386_v10  ;;  %v3258_v9 = vld [vmem:[%s4234_s7 + $0x8] sm:$0xff]   ;;  %2983 = vmatpush3.bf16.msra.mxu0 %v3268_v8  ;;  %v3269_v12 = vld [vmem:[%s4236_s9 + $0x18] sm:$0xff]  }
 0x318   :  { %v1377_v42 = vpop.f32.mrf.mxu0  ;;  %2984 = vmatprep.subr.bf16.mxu0 %v3355_v52  ;;  %v3270_v24 = vld [vmem:[%s4236_s9 + $0x58] sm:$0xff]  }
 0x319   :  { %v1388_v36 = vadd.f32 %v1377_v42, %v1222_v32  ;;  %v1551_v0 = vadd.f32 %v1537_v30, %v1387_v13  ;;  %v3259_v30 = vld [vmem:[%s4235_s8] sm:$0xff]   ;;  %v3271_v42 = vld [vmem:[%s4236_s9 + $0x10] sm:$0xff]  }
 0x31a   :  { %v1379_v59 = vpop.f32.mrf.mxu0 }
 0x31b   :  { %v1389_v61 = vadd.f32 %v1379_v59, %v1224_v49  ;;  %v1552_v37 = vadd.f32 %v1541_v58, %v1388_v36  ;;  %v3261_v58 = vld [vmem:[%s4236_s9 + $0x38] sm:$0xff]   ;;  %2985 = vmatpush3.bf16.msra.mxu0 %v3270_v24  ;;  %v3272_v59 = vld [vmem:[%s4236_s9 + $0x50] sm:$0xff]  }
 0x31c   :  { %v1381_v60 = vpop.f32.mrf.mxu0  ;;  %2986 = vmatprep.subr.bf16.mxu0 %v3355_v52  ;;  %v3277_v36 = vld [vmem:[%s4236_s9 + $0xf8] sm:$0xff]  }
 0x31d   :  { %v1553_v19 = vadd.f32 %v1543_v31, %v1389_v61  ;;  %v3265_v31 = vld [vmem:[%s4236_s9 + $0x28] sm:$0xff]   ;;  %v3278_v49 = vld [vmem:[%s4236_s9 + $0xb8] sm:$0xff]  }
 0x31e   :  { %v1382_v29 = vpop.f32.mrf.mxu0  ;;  %v3273_v60 = vld [vmem:[%s4236_s9 + $0x8] sm:$0xff]  }
 0x31f   :  { %2987 = vmatpush3.bf16.msra.mxu0 %v3272_v59  ;;  %v3274_v29 = vld [vmem:[%s4236_s9 + $0x48] sm:$0xff]  }
 0x320   :  { %2988 = vmatprep.subr.bf16.mxu0 %v3355_v52  ;;  %v3282_v61 = vld [vmem:[%s4236_s9 + $0xa8] sm:$0xff]  }
 0x323   :  { %2989 = vmatpush3.bf16.msra.mxu0 %v3274_v29 }
 0x324   :  { %2990 = vmatprep.subr.bf16.mxu0 %v3355_v52 }
 0x327   :  { %2991 = vmatpush3.bf16.msra.mxu0 %v3276_v33 }
 0x328   :  { %3016 = vmatprep.subr.bf16.mxu0 %v3355_v52 }
 0x330   :  { %v1691_v45 = vpop.f32.mrf.mxu0 }
 0x331   :  { %v1708_v38 = vadd.f32 %v1691_v45, %v1548_v43 }
 0x332   :  { %v1693_v15 = vpop.f32.mrf.mxu0 }
 0x333   :  { %v1726_v41 = vadd.f32 %v1719_v11, %v1708_v38  ;;  %v1709_v18 = vadd.f32 %v1693_v15, %v1549_v16 }
 0x334   :  { %v1695_v55 = vpop.f32.mrf.mxu0 }
 0x335   :  { %v1727_v44 = vadd.f32 %v1723_v48, %v1709_v18  ;;  %v1710_v62 = vadd.f32 %v1695_v55, %v1550_v54  ;;  %v1732_v51 = vmax.f32 %v1726_v41, 0.0  ;;  %v3279_v18 = vld [vmem:[%s4236_s9 + $0xf0] sm:$0xff]   ;;  %v3281_v55 = vld [vmem:[%s4236_s9 + $0xe8] sm:$0xff]  }
 0x336   :  { %v1697_v40 = vpop.f32.mrf.mxu0  ;;  %v3280_v54 = vld [vmem:[%s4236_s9 + $0xb0] sm:$0xff]  }
 0x337   :  { %v1733_v39 = vmax.f32 %v1727_v44, 0.0  ;;  %v1728_v17 = vadd.f32 %v1719_v11, %v1710_v62  ;;  %v1711_v20 = vadd.f32 %v1697_v40, %v1551_v0  ;;  %v3283_v44 = vld [vmem:[%s4236_s9 + $0xe0] sm:$0xff]   ;;  %v3285_v0 = vld [vmem:[%s4236_s9 + $0xd8] sm:$0xff]  }
 0x338   :  { %v1701_v63 = vpop.f32.mrf.mxu0  ;;  %v3284_v62 = vld [vmem:[%s4236_s9 + $0xa0] sm:$0xff]   ;;  %v3286_v40 = vld [vmem:[%s4236_s9 + $0x98] sm:$0xff]  }
 0x339   :  { %v1738_v34 = vmax.f32 %v1732_v51, %v1733_v39  ;;  %v1729_v46 = vadd.f32 %v1723_v48, %v1711_v20  ;;  %v1712_v1 = vadd.f32 %v1701_v63, %v1552_v37  ;;  %v1734_v47 = vmax.f32 %v1728_v17, 0.0  ;;  %v3287_v37 = vld [vmem:[%s4236_s9 + $0xd0] sm:$0xff]   ;;  %v3289_v39 = vld [vmem:[%s4236_s9 + $0xc8] sm:$0xff]  }
 0x33a   :  { %v1703_v2 = vpop.f32.mrf.mxu0  ;;  %v3288_v51 = vld [vmem:[%s4236_s9 + $0x90] sm:$0xff]   ;;  %v3290_v20 = vld [vmem:[%s4236_s9 + $0x88] sm:$0xff]  }
 0x33b   :  { %v1735_v23 = vmax.f32 %v1729_v46, 0.0  ;;  %v1730_v3 = vadd.f32 %v1719_v11, %v1712_v1  ;;  %v1713_v4 = vadd.f32 %v1703_v2, %v1553_v19  ;;  %v3292_v1 = vld [vmem:[%s4236_s9 + $0x80] sm:$0xff]   ;;  %v3293_v2 = vld [vmem:[%s4238_s11 + $0x38] ss:$0 sps:$4 sm:$0xff]  }
 0x33c   :  { %v1705_v22 = vpop.f32.mrf.mxu0 }
 0x33d   :  { %v1739_v50 = vmax.f32 %v1734_v47, %v1735_v23  ;;  %v1731_v21 = vadd.f32 %v1723_v48, %v1713_v4  ;;  %v1736_v53 = vmax.f32 %v1730_v3, 0.0  ;;  %v2401_v47 = vsel %vm2399_vm9, %v3293_v2, 0  ;;  %v3294_v23 = vld [vmem:[%s4238_s11 + $0x30] sm:$0xff]   ;;  %v3295_v3 = vld [vmem:[%s4238_s11 + $0x28] sm:$0xff]   ;;  %v3296_v4 = vld [vmem:[%s4238_s11 + $0x20] sm:$0xff]  }
 0x33e   :  { %v1706_v27 = vpop.f32.mrf.mxu0  ;;  %v3297_v22 = vld [vmem:[%s4238_s11 + $0x18] sm:$0xff]  }
 0x33f   :  { %v1741_v25 = vpack.c.bf16 %v1739_v50, %v1738_v34  ;;  %v1737_v28 = vmax.f32 %v1731_v21, 0.0  ;;  %v3291_v34 = vld [vmem:[%s4236_s9 + $0xc0] sm:$0xff]   ;;  %v3298_v50 = vld [vmem:[%s4238_s11 + $0x10] sm:$0xff]   ;;  %v3299_v21 = vld [vmem:[%s4238_s11 + $0x8] sm:$0xff]  }
 0x340   :  { %v3300_v27 = vld [vmem:[%s4238_s11] sm:$0xff]  }
 0x341   :  { %v1740_v5 = vmax.f32 %v1736_v53, %v1737_v28  ;;  %v3302_v28 = vld [vmem:[%s4240_s13 + $0x20] sm:$0xff]  }
 0x343   :  { %v1742_v6 = vpack.c.bf16 %v1740_v5, %v1740_v5  ;;  %v3303_v5 = vld [vmem:[%s4240_s13 + $0x18] sm:$0xff]  }
 0x345   :  { %3094 = vmatprep.subr.msk.bf16.mxu1 %vm793_vm3, %v1742_v6  ;;  %v1765_v7 = vsel %vm793_vm3, %v1742_v6, 0 }
 0x346   :  { %2961 = vmatpush3.bf16.msra.mxu1 %v1765_v7 }
 0x347   :  { %2962 = vmatprep.subr.bf16.mxu1 %v1741_v25 }
 0x34a   :  { %2963 = vmatpush3.bf16.msra.mxu1 %v1741_v25 }
 0x34b   :  { %3095 = vmatprep.subr.msk.bf16.mxu1 %vm793_vm3, %v1742_v6  ;;  %v3304_v6 = vld [vmem:[%s4240_s13 + $0x10] sm:$0xff]  }
 0x34d   :  { %2965 = vmatmul.mubr.msk.bf16.vlgmr.msra.gmra.mxu1 %vm1757_vm7, %v3258_v9 }
 0x34e   :  { %2969 = vmatpush3.bf16.msra.mxu1 %v1765_v7  ;;  %2972 = vmatprep.mubr.msk.bf16.mxu1 %vm1757_vm7, %v3259_v30 }
 0x34f   :  { %2970 = vmatprep.subr.bf16.mxu1 %v1741_v25 }
 0x352   :  { %2971 = vmatpush3.bf16.msra.mxu1 %v1741_v25  ;;  %v3301_v25 = vld [vmem:[%s4240_s13 + $0x28] ss:$0 sps:$4 sm:$0x33]  }
 0x353   :  { %2996 = vmatprep.subr.bf16.mxu1 %v3355_v52  ;;  %v2501_v53 = vsel %vm793_vm3, %v3301_v25, 0 }
 0x355   :  { %2973 = vmatmul.mubr.msk.bf16.vlgmr.msra.gmra.mxu1 %vm1757_vm7, %v3260_v57 }
 0x356   :  { %2997 = vmatpush3.bf16.msra.mxu1 %v3261_v58  ;;  %3012 = vmatprep.mubr.msk.bf16.mxu1 %vm3356_vm8, %v3355_v52 }
 0x357   :  { %2998 = vmatprep.subr.bf16.mxu1 %v3355_v52 }
 0x35a   :  { %2999 = vmatpush3.bf16.msra.mxu1 %v3263_v56 }
 0x35b   :  { %3000 = vmatprep.subr.bf16.mxu1 %v3355_v52 }
 0x35e   :  { %3001 = vmatpush3.bf16.msra.mxu1 %v3265_v31 }
 0x35f   :  { %3002 = vmatprep.subr.bf16.mxu1 %v3355_v52 }
 0x362   :  { %3003 = vmatpush3.bf16.msra.mxu1 %v3267_v26 }
 0x363   :  { %3004 = vmatprep.subr.bf16.mxu1 %v3355_v52 }
 0x366   :  { %3005 = vmatpush3.bf16.msra.mxu1 %v3269_v12 }
 0x367   :  { %3006 = vmatprep.subr.bf16.mxu1 %v3355_v52 }
 0x36a   :  { %3007 = vmatpush3.bf16.msra.mxu1 %v3271_v42 }
 0x36b   :  { %3008 = vmatprep.subr.bf16.mxu1 %v3355_v52 }
 0x36e   :  { %3009 = vmatpush3.bf16.msra.mxu1 %v3273_v60  ;;  %v2845_v60 = vld [vmem:[%s4237_s10] ss:$0 sm:$0xff] }
 0x36f   :  { %3010 = vmatprep.subr.bf16.mxu1 %v3355_v52 }
 0x372   :  { %3011 = vmatpush3.bf16.msra.mxu1 %v3275_v35 }
 0x373   :  { %3036 = vmatprep.subr.bf16.mxu1 %v3355_v52 }
 0x40d   :  { %v2966_v14 = vpop.f32.mrf.mxu1 }
 0x40f   :  { %v1801_v10 = vpop.f32.mrf.mxu1 }
 0x411   :  { %v2967_v43 = vpop.f32.mrf.mxu1 }
 0x413   :  { %v1804_v11 = vpop.f32.mrf.mxu1 }
 0x415   :  { %v2974_v32 = vpop.f32.mrf.mxu1 }
 0x416   :  { %v1887_v63 = vmax.f32 %v2966_v14, %v2974_v32 }
 0x417   :  { %v1870_v45 = vpop.f32.mrf.mxu1 }
 0x418   :  { %v1885_v16 = vmax.f32 %v1801_v10, %v1870_v45 }
 0x419   :  { %v2975_v13 = vpop.f32.mrf.mxu1 }
 0x41a   :  { %v1888_v17 = vmax.f32 %v2967_v43, %v2975_v13  ;;  %v3305_v13 = vld [vmem:[%s4240_s13 + $0x8] sm:$0xff]  }
 0x41b   :  { %v1873_v38 = vpop.f32.mrf.mxu1 }
 0x41c   :  { %v1886_v48 = vmax.f32 %v1804_v11, %v1873_v38  ;;  %v1890_v46 = vpack.c.bf16 %v1888_v17, %v1887_v63  ;;  %v3306_v38 = vld [vmem:[%s4240_s13] sm:$0xff]   ;;  %s2551_s13 = sshll.u32 %s3357_s28, 4  ;;  %s2552_s13 = int_to_ptr.vmem [resolvable:$true] %s2551_s13 }
 0x41d   :  { %p3332_p6 = scmp.lt.s32.totalorder %s2552_s13, %s2552_s13 }
 0x41e   :  { %v1889_v15 = vpack.c.bf16 %v1886_v48, %v1885_v16  ;;  %v2227_v19 = vrot.slane %v1890_v46, 4  ;;  %v2846_v16 = vld [vmem:[%s4239_s12] ss:$0 sm:$0xff]  ;;  %s3327_s12 = scalar_lea.vmem %s2552_s13, 32 }
 0x41f   :  { %p3328_p5 = scmp.ne.s32.totalorder %s2552_s13, %s3327_s12  ;;  %p3333_p7 = scmp.lt.s32.totalorder %s3327_s12, %s3327_s12 }
 0x420   :  { %v1925_v41 = vrot.slane %v1889_v15, 4  ;;  %3013 = vmatmul.mubr.bf16.vlgmr.msra.gmra.mxu1 %v1889_v15 }
 0x421   :  { %3037 = vmatpush3.bf16.msra.mxu1 %v3277_v36  ;;  %3052 = vmatprep.mubr.msk.bf16.mxu1 %vm3356_vm8, %v3355_v52  ;;  %p3334_p8 = por %p3333_p7, %p3332_p6 }
 0x422   :  { %2993 = vmatmul.mubr.bf16.vlgmr.msra.gmra.mxu0 %v1925_v41  ;;  %3038 = vmatprep.subr.bf16.mxu1 %v3355_v52 }
 0x423   :  { %3017 = vmatpush3.bf16.msra.mxu0 %v3278_v49  ;;  %3032 = vmatprep.mubr.msk.bf16.mxu0 %vm3356_vm8, %v3355_v52  ;;  %p3335_p9 = pnand %p3334_p8, %p3328_p5 }
 0x424   :  { %3018 = vmatprep.subr.bf16.mxu0 %v3355_v52 }
 0x425   :  { %3039 = vmatpush3.bf16.msra.mxu1 %v3279_v18 }
 0x426   :  { %3040 = vmatprep.subr.bf16.mxu1 %v3355_v52 }
 0x427   :  { %3019 = vmatpush3.bf16.msra.mxu0 %v3280_v54 }
 0x428   :  { %3020 = vmatprep.subr.bf16.mxu0 %v3355_v52 }
 0x429   :  { %3041 = vmatpush3.bf16.msra.mxu1 %v3281_v55 }
 0x42a   :  { %3042 = vmatprep.subr.bf16.mxu1 %v3355_v52 }
 0x42b   :  { %3021 = vmatpush3.bf16.msra.mxu0 %v3282_v61 }
 0x42c   :  { %3022 = vmatprep.subr.bf16.mxu0 %v3355_v52 }
 0x42d   :  { %3043 = vmatpush3.bf16.msra.mxu1 %v3283_v44 }
 0x42e   :  { %3044 = vmatprep.subr.bf16.mxu1 %v3355_v52 }
 0x42f   :  { %3023 = vmatpush3.bf16.msra.mxu0 %v3284_v62 }
 0x430   :  { %3024 = vmatprep.subr.bf16.mxu0 %v3355_v52 }
 0x431   :  { %3045 = vmatpush3.bf16.msra.mxu1 %v3285_v0 }
 0x432   :  { %3046 = vmatprep.subr.bf16.mxu1 %v3355_v52 }
 0x433   :  { %3025 = vmatpush3.bf16.msra.mxu0 %v3286_v40 }
 0x434   :  { %3026 = vmatprep.subr.bf16.mxu0 %v3355_v52 }
 0x435   :  { %3047 = vmatpush3.bf16.msra.mxu1 %v3287_v37 }
 0x436   :  { %3048 = vmatprep.subr.bf16.mxu1 %v3355_v52 }
 0x437   :  { %3027 = vmatpush3.bf16.msra.mxu0 %v3288_v51 }
 0x438   :  { %3028 = vmatprep.subr.bf16.mxu0 %v3355_v52 }
 0x439   :  { %3049 = vmatpush3.bf16.msra.mxu1 %v3289_v39 }
 0x43a   :  { %3050 = vmatprep.subr.bf16.mxu1 %v3355_v52 }
 0x43b   :  { %3029 = vmatpush3.bf16.msra.mxu0 %v3290_v20 }
 0x43c   :  { %3030 = vmatprep.subr.bf16.mxu0 %v3355_v52 }
 0x43d   :  { %3051 = vmatpush3.bf16.msra.mxu1 %v3291_v34 }
 0x43e   :  { %3076 = vmatprep.subr.bf16.mxu1 %v3355_v52 }
 0x43f   :  { %3031 = vmatpush3.bf16.msra.mxu0 %v3292_v1 }
 0x440   :  { %3053 = vmatmul.mubr.bf16.vlgmr.msra.gmra.mxu1 %v2227_v19  ;;  %3056 = vmatprep.subr.bf16.mxu0 %v3355_v52 }
 0x441   :  { %3088 = vmatprep.mubr.msk.bf16.mxu1 %vm3356_vm8, %v3355_v52  ;;  %3077 = vmatpush3.bf16.msra.mxu1 %v2501_v53 }
 0x442   :  { %3033 = vmatmul.mubr.bf16.vlgmr.msra.gmra.mxu0 %v1890_v46  ;;  %3078 = vmatprep.subr.bf16.mxu1 %v3355_v52 }
 0x443   :  { %3072 = vmatprep.mubr.msk.bf16.mxu0 %vm3356_vm8, %v3355_v52  ;;  %3057 = vmatpush3.bf16.msra.mxu0 %v2401_v47 }
 0x444   :  { %3058 = vmatprep.subr.bf16.mxu0 %v3355_v52 }
 0x445   :  { %3079 = vmatpush3.bf16.msra.mxu1 %v3302_v28 }
 0x446   :  { %3080 = vmatprep.subr.bf16.mxu1 %v3355_v52 }
 0x447   :  { %3059 = vmatpush3.bf16.msra.mxu0 %v3294_v23 }
 0x448   :  { %3060 = vmatprep.subr.bf16.mxu0 %v3355_v52 }
 0x449   :  { %3081 = vmatpush3.bf16.msra.mxu1 %v3303_v5 }
 0x44a   :  { %3082 = vmatprep.subr.bf16.mxu1 %v3355_v52 }
 0x44b   :  { %3061 = vmatpush3.bf16.msra.mxu0 %v3295_v3 }
 0x44c   :  { %3062 = vmatprep.subr.bf16.mxu0 %v3355_v52 }
 0x44d   :  { %3083 = vmatpush3.bf16.msra.mxu1 %v3304_v6 }
 0x44e   :  { %3084 = vmatprep.subr.bf16.mxu1 %v3355_v52 }
 0x44f   :  { %3063 = vmatpush3.bf16.msra.mxu0 %v3296_v4 }
 0x450   :  { %3064 = vmatprep.subr.bf16.mxu0 %v3355_v52 }
 0x451   :  { %3085 = vmatpush3.bf16.msra.mxu1 %v3305_v13 }
 0x452   :  { %3086 = vmatprep.subr.bf16.mxu1 %v3355_v52 }
 0x453   :  { %3065 = vmatpush3.bf16.msra.mxu0 %v3297_v22 }
 0x454   :  { %3066 = vmatprep.subr.bf16.mxu0 %v3355_v52 }
 0x455   :  { %3087 = vmatpush3.bf16.msra.mxu1 %v3306_v38 }
 0x457   :  { %3067 = vmatpush3.bf16.msra.mxu0 %v3298_v50 }
 0x458   :  { %3068 = vmatprep.subr.bf16.mxu0 %v3355_v52 }
 0x45b   :  { %3069 = vmatpush3.bf16.msra.mxu0 %v3299_v21 }
 0x45c   :  { %3070 = vmatprep.subr.bf16.mxu0 %v3355_v52  ;;  %v2856_v52 = vld [vmem:[%s4241_s14] ss:$0 sm:$0xff] }
 0x45f   :  { %3071 = vmatpush3.bf16.msra.mxu0 %v3300_v27 }
 0x4e0   :  { %v2097_v7 = vpop.f32.mrf.mxu1 }
 0x4e2   :  { %v2009_v9 = vpop.f32.mrf.mxu0  ;;  %v3014_v30 = vpop.f32.mrf.mxu1 }
 0x4e3   :  { %v2098_v12 = vadd.f32 %v2097_v7, %v2009_v9 }
 0x4e4   :  { %v2994_v57 = vpop.f32.mrf.mxu0  ;;  %v2100_v58 = vpop.f32.mrf.mxu1 }
 0x4e6   :  { %v2012_v56 = vpop.f32.mrf.mxu0  ;;  %v3015_v31 = vpop.f32.mrf.mxu1 }
 0x4e8   :  { %v2995_v26 = vpop.f32.mrf.mxu0 }
 0x500   :  { %v2311_v8 = vpop.f32.mrf.mxu1 }
 0x502   :  { %v2202_v24 = vpop.f32.mrf.mxu0  ;;  %v3054_v42 = vpop.f32.mrf.mxu1 }
 0x503   :  { %v2208_v59 = vadd.f32 %v2202_v24, %v2098_v12 }
 0x504   :  { %v3034_v29 = vpop.f32.mrf.mxu0  ;;  %v2314_v35 = vpop.f32.mrf.mxu1 }
 0x505   :  { %v2317_v33 = vadd.f32 %v2311_v8, %v2208_v59 }
 0x506   :  { %v2205_v14 = vpop.f32.mrf.mxu0  ;;  %v3055_v10 = vpop.f32.mrf.mxu1 }
 0x507   :  { %v2325_v43 = vadd.f32 %v2845_v60, %v2317_v33 }
 0x508   :  { %v3035_v11 = vpop.f32.mrf.mxu0 }
 0x509   :  { %v2326_v32 = vmax.f32 %v2325_v43, 0.0 }
 0x50b   :  { %v2327_v45 = vpack.c.bf16 %v2326_v32, %v2326_v32 }
 0x50d   :  { %3073 = vmatmul.mubr.msk.bf16.vlgmr.msra.gmra.mxu0 %vm2395_vm10, %v2327_v45 }
 0x5cd   :  { %v2437_v48 = vpop.f32.mrf.mxu0 }
 0x5ce   :  { %v2438_v36 = vadd.f32 %v2846_v16, %v2437_v48 }
 0x5cf   :  { %v3074_v15 = vpop.f32.mrf.mxu0 }
 0x5d0   :  { %v2443_v49 = vmax.f32 %v2438_v36, 0.0 }
 0x5d1   :  { %v2440_v41 = vpop.f32.mrf.mxu0 }
 0x5d2   :  { %v2444_v18 = vpack.c.bf16 %v2443_v49, %v2443_v49 }
 0x5d3   :  { %v3075_v54 = vpop.f32.mrf.mxu0 }
 0x5d4   :  { %3089 = vmatmul.mubr.msk.bf16.vlgmr.msra.gmra.mxu1 %vm2496_vm11, %v2444_v18 }
 0x694   :  { %v2537_v55 = vpop.f32.mrf.mxu1 }
 0x695   :  { %v2538_v61 = vadd.f32 %v2856_v52, %v2537_v55 }
 0x696   :  { %v3090_v44 = vpop.f32.mrf.mxu1 }
 0x697   :  { %2544 = vst.msk [vmem:[#allocation5] sm:$0x3] %vm2543_vm12, %v2538_v61 }
 0x698   :  { %v2540_v62 = vpop.f32.mrf.mxu1 }
 0x699   :  { %3338 = shalt.err (!%p3335_p9)
}
 0x69a   :  { %2554 = dma.vmem_to_hbm [thread:$0]  %s2552_s13, 32, %s4242_s15, [#allocation4]   ;;  %v3091_v0 = vpop.f32.mrf.mxu1 }
 0x69b   :  { %3349 = dma.done.wait [#allocation4], 32  }
 0x69c   :  { %3350 = vsyncadd [#allocation4], 4294967264 }
 0x69d   :  { %2558 = vsyncpa [#allocation3], 1 }
 0x69e   :  { %2559 = vsyncpa [#allocation4], 1 }

</bundles_post_ra>
